<compile_context>
chip_gen: v7x
topology: tpu7x:2x2x1
jax: 0.10.0
libtpu: 0.0.40
codegen_flags: <defaults>
</compile_context>

<pallas_src>
import functools

import jax
import jax.numpy as jnp
from jax import lax
from jax.experimental import pallas as pl
from jax.experimental.pallas import tpu as pltpu

LN_EPS = 1e-5
NEG_INF = -1e30


# ------------------------------ kernel helpers -------------------------------
def _layer_norm(x, g, b, eps=LN_EPS):
    # x: (N, E) f32, g/b: (1, E) f32
    mu = jnp.mean(x, axis=-1, keepdims=True)
    var = jnp.mean((x - mu) ** 2, axis=-1, keepdims=True)
    return (x - mu) * lax.rsqrt(var + eps) * g + b


# ------------------------------ fused LLM kernel ------------------------------
def llm_kernel(x_ref, bias_ref,
               ln1_g_ref, ln1_b_ref, wq_ref, wk_ref, wv_ref,
               wproj_ref, bproj_ref, ln2_g_ref, ln2_b_ref,
               w1_ref, b1_ref, w2_ref, b2_ref,
               lnf_g_ref, lnf_b_ref, wout_ref, bout_ref,
               out_ref, *, n_blocks, n_heads, head_size):
    f32, bf16 = jnp.float32, jnp.bfloat16
    x = x_ref[...]                                     # (N, E) f32 residual stream
    N, E = x.shape
    H, hs = n_heads, head_size
    scale = 1.0 / (hs ** 0.5)

    # Hoisted once: additive causal/batch mask broadcast over heads.
    bias = jnp.broadcast_to(bias_ref[...][None, :, :], (H, N, N))   # (H, N, N)

    for blk in range(n_blocks):                        # static unroll over layers
        # ------------------ multi-head causal self-attention ------------------
        h = _layer_norm(x, ln1_g_ref[blk], ln1_b_ref[blk])          # (N, E) f32
        hb = jnp.broadcast_to(h.astype(bf16)[None], (H, N, E))      # (H, N, E) bf16

        # Batched projections: (H, N, E) @ (H, E, hs) -> (H, N, hs)
        q = jnp.einsum('hne,hed->hnd', hb, wq_ref[blk], preferred_element_type=f32)
        k = jnp.einsum('hne,hed->hnd', hb, wk_ref[blk], preferred_element_type=f32)
        v = jnp.einsum('hne,hed->hnd', hb, wv_ref[blk], preferred_element_type=f32)

        # Scores for all heads at once: (H, N, N)
        s = jnp.einsum('hnd,hmd->hnm', (q * scale).astype(bf16), k.astype(bf16),
                       preferred_element_type=f32)
        s = s + bias
        m = jnp.max(s, axis=-1, keepdims=True)
        e = jnp.exp(s - m)
        p = e * pl.reciprocal(jnp.sum(e, axis=-1, keepdims=True), approx=True)

        # Weighted values: (H, N, hs)
        ctx = jnp.einsum('hnm,hmd->hnd', p.astype(bf16), v.astype(bf16),
                         preferred_element_type=f32)
        # Output projection, batched per head then summed over the head axis
        # (equivalent to concat(heads) @ Wproj, without any lane concat).
        a = jnp.einsum('hnd,hde->hne', ctx.astype(bf16), wproj_ref[blk],
                       preferred_element_type=f32)                  # (H, N, E)
        attn = jnp.sum(a, axis=0) + bproj_ref[blk]                  # (N, E)
        x = x + attn                                                # residual 1

        # ------------------------------ feedforward ---------------------------
        h2 = _layer_norm(x, ln2_g_ref[blk], ln2_b_ref[blk])
        f1 = jnp.dot(h2.astype(bf16), w1_ref[blk],
                     preferred_element_type=f32) + b1_ref[blk]
        f1 = jnp.maximum(f1, 0.0)
        f2 = jnp.dot(f1.astype(bf16), w2_ref[blk],
                     preferred_element_type=f32) + b2_ref[blk]
        x = x + f2                                                  # residual 2

    # ------------------ final LayerNorm + (lane-padded) vocab projection ------
    hf = _layer_norm(x, lnf_g_ref[...], lnf_b_ref[...])
    out_ref[...] = (jnp.dot(hf.astype(bf16), wout_ref[...],
                            preferred_element_type=f32) + bout_ref[...])


# --------------------------------- wrapper ------------------------------------
def _full_spec(a):
    nd = a.ndim
    return pl.BlockSpec(a.shape, lambda i, _nd=nd: (0,) * _nd)


def llm_pallas_forward(params, x_emb, mask_bias, *, n_heads, head_size, n_blocks):
    N, _ = x_emb.shape
    Vp = params["wout"].shape[1]
    ins = [x_emb, mask_bias,
           params["ln1_g"], params["ln1_b"], params["wq"], params["wk"],
           params["wv"], params["wproj"], params["bproj"],
           params["ln2_g"], params["ln2_b"],
           params["w1"], params["b1"], params["w2"], params["b2"],
           params["ln_g"], params["ln_b"], params["wout"], params["bout"]]
    kernel = functools.partial(llm_kernel, n_blocks=n_blocks,
                               n_heads=n_heads, head_size=head_size)
    return pl.pallas_call(
        kernel,
        out_shape=jax.ShapeDtypeStruct((N, Vp), jnp.float32),
        grid=(1,),
        in_specs=[_full_spec(a) for a in ins],
        out_specs=pl.BlockSpec((N, Vp), lambda i: (0, 0)),
        compiler_params=pltpu.CompilerParams(
            dimension_semantics=("arbitrary",)),
    )(*ins)


# ------------------------------ params / model --------------------------------
def init_llm_params(key, *, block_size, n_embed, vocab_size, head_size,
                    n_heads, ff_proj_factor, n_trans_blocks):
    E = n_heads * head_size
    assert E == n_embed, "residual connections require n_embed == n_heads*head_size"
    F = ff_proj_factor * E
    L = n_trans_blocks
    Vp = ((vocab_size + 127) // 128) * 128
    std = 0.02
    ks = jax.random.split(key, 9)

    def nrm(k, shape, dtype=jnp.float32):
        return (std * jax.random.normal(k, shape, dtype=jnp.float32)).astype(dtype)

    wout = jnp.zeros((E, Vp), jnp.float32)
    wout = wout.at[:, :vocab_size].set(
        std * jax.random.normal(ks[2], (E, vocab_size), dtype=jnp.float32))

    return {
        "tok_emb": nrm(ks[0], (vocab_size, E)),
        "pos_emb": nrm(ks[1], (block_size, E)),
        # per-block weights stacked on a leading layer axis, matmul weights bf16
        "ln1_g": jnp.ones((L, 1, E), jnp.float32),
        "ln1_b": jnp.zeros((L, 1, E), jnp.float32),
        "wq": nrm(ks[3], (L, n_heads, E, head_size), jnp.bfloat16),
        "wk": nrm(ks[4], (L, n_heads, E, head_size), jnp.bfloat16),
        "wv": nrm(ks[5], (L, n_heads, E, head_size), jnp.bfloat16),
        "wproj": nrm(ks[6], (L, n_heads, head_size, E), jnp.bfloat16),
        "bproj": jnp.zeros((L, 1, E), jnp.float32),
        "ln2_g": jnp.ones((L, 1, E), jnp.float32),
        "ln2_b": jnp.zeros((L, 1, E), jnp.float32),
        "w1": nrm(ks[7], (L, E, F), jnp.bfloat16),
        "b1": jnp.zeros((L, 1, F), jnp.float32),
        "w2": nrm(ks[8], (L, F, E), jnp.bfloat16),
        "b2": jnp.zeros((L, 1, E), jnp.float32),
        "ln_g": jnp.ones((1, E), jnp.float32),
        "ln_b": jnp.zeros((1, E), jnp.float32),
        "wout": wout.astype(jnp.bfloat16),          # lane-padded to Vp
        "bout": jnp.zeros((1, Vp), jnp.float32),
    }


def llm_forward(params, tokens, y=None, *, n_heads, head_size, n_trans_blocks,
                vocab_size):
    # tokens: (B, T) int32
    B, T = tokens.shape
    E = params["tok_emb"].shape[1]
    N = B * T

    # Embedding gather + positional add (plain-JAX glue outside the kernel).
    tok_vect = params["tok_emb"][tokens]               # (B, T, E)
    pos_vect = params["pos_emb"][:T]
    x = (tok_vect + pos_vect[None, :, :]).reshape(N, E).astype(jnp.float32)

    # Additive mask combining causality and batch-block separation on the
    # folded (N, N) score matrix; computed once here, reused by every layer.
    r = jnp.arange(N, dtype=jnp.int32)
    same_seq = (r[:, None] // T) == (r[None, :] // T)
    causal = r[None, :] <= r[:, None]
    mask_bias = jnp.where(same_seq & causal, 0.0, NEG_INF).astype(jnp.float32)

    logits_p = llm_pallas_forward(params, x, mask_bias, n_heads=n_heads,
                                  head_size=head_size, n_blocks=n_trans_blocks)
    logits = logits_p[:, :vocab_size]                  # strip lane padding

    loss = None
    if y is not None:
        yf = y.reshape(N)
        logp = jax.nn.log_softmax(logits, axis=-1)
        loss = -jnp.mean(jnp.take_along_axis(logp, yf[:, None], axis=-1))
    return logits, loss


# ----------------------------------- main --------------------------------------
if __name__ == "__main__":
    block_size = 8
    n_embed = 32
    vocab_size = 64
    head_size = 8
    n_heads = 4
    ff_proj_factor = 4
    n_trans_blocks = 2
    B, T = 2, block_size

    key = jax.random.PRNGKey(0)
    pkey, xkey, ykey = jax.random.split(key, 3)
    params = init_llm_params(
        pkey, block_size=block_size, n_embed=n_embed, vocab_size=vocab_size,
        head_size=head_size, n_heads=n_heads, ff_proj_factor=ff_proj_factor,
        n_trans_blocks=n_trans_blocks)

    tokens = jax.random.randint(xkey, (B, T), 0, vocab_size, dtype=jnp.int32)
    targets = jax.random.randint(ykey, (B, T), 0, vocab_size, dtype=jnp.int32)

    logits, loss = llm_forward(params, tokens, targets, n_heads=n_heads,
                               head_size=head_size, n_trans_blocks=n_trans_blocks,
                               vocab_size=vocab_size)
    jax.block_until_ready(logits)
    jax.block_until_ready(loss)
    assert logits.shape == (B * T, vocab_size)
    assert bool(jnp.isfinite(loss))
    print("KERNEL_OK")
</pallas_src>

<mosaic_0001>
module attributes {stable_mosaic.version = 11 : i64} {
  func.func @llm_kernel(%arg0: i32, %arg1: memref<16x32xf32, #tpu.memory_space<vmem>>, %arg2: memref<16x16xf32, #tpu.memory_space<vmem>>, %arg3: memref<2x1x32xf32, #tpu.memory_space<vmem>>, %arg4: memref<2x1x32xf32, #tpu.memory_space<vmem>>, %arg5: memref<2x4x32x8xbf16, #tpu.memory_space<vmem>>, %arg6: memref<2x4x32x8xbf16, #tpu.memory_space<vmem>>, %arg7: memref<2x4x32x8xbf16, #tpu.memory_space<vmem>>, %arg8: memref<2x4x8x32xbf16, #tpu.memory_space<vmem>>, %arg9: memref<2x1x32xf32, #tpu.memory_space<vmem>>, %arg10: memref<2x1x32xf32, #tpu.memory_space<vmem>>, %arg11: memref<2x1x32xf32, #tpu.memory_space<vmem>>, %arg12: memref<2x32x128xbf16, #tpu.memory_space<vmem>>, %arg13: memref<2x1x128xf32, #tpu.memory_space<vmem>>, %arg14: memref<2x128x32xbf16, #tpu.memory_space<vmem>>, %arg15: memref<2x1x32xf32, #tpu.memory_space<vmem>>, %arg16: memref<1x32xf32, #tpu.memory_space<vmem>>, %arg17: memref<1x32xf32, #tpu.memory_space<vmem>>, %arg18: memref<32x128xbf16, #tpu.memory_space<vmem>>, %arg19: memref<1x128xf32, #tpu.memory_space<vmem>>, %arg20: memref<16x128xf32, #tpu.memory_space<vmem>>) attributes {dimension_semantics = [#tpu.dimension_semantics<arbitrary>], iteration_bounds = array<i64: 1>, scalar_prefetch = 0 : i64, scratch_operands = 0 : i64, tpu.core_type = #tpu.core_type<tc>, window_params = [{pipeline_mode = #tpu.pipeline_mode<synchronous>, transform_indices = @transform_0, window_bounds = array<i64: 16, 32>}, {pipeline_mode = #tpu.pipeline_mode<synchronous>, transform_indices = @transform_1, window_bounds = array<i64: 16, 16>}, {pipeline_mode = #tpu.pipeline_mode<synchronous>, transform_indices = @transform_2, window_bounds = array<i64: 2, 1, 32>}, {pipeline_mode = #tpu.pipeline_mode<synchronous>, transform_indices = @transform_3, window_bounds = array<i64: 2, 1, 32>}, {pipeline_mode = #tpu.pipeline_mode<synchronous>, transform_indices = @transform_4, window_bounds = array<i64: 2, 4, 32, 8>}, {pipeline_mode = #tpu.pipeline_mode<synchronous>, transform_indices = @transform_5, window_bounds = array<i64: 2, 4, 32, 8>}, {pipeline_mode = #tpu.pipeline_mode<synchronous>, transform_indices = @transform_6, window_bounds = array<i64: 2, 4, 32, 8>}, {pipeline_mode = #tpu.pipeline_mode<synchronous>, transform_indices = @transform_7, window_bounds = array<i64: 2, 4, 8, 32>}, {pipeline_mode = #tpu.pipeline_mode<synchronous>, transform_indices = @transform_8, window_bounds = array<i64: 2, 1, 32>}, {pipeline_mode = #tpu.pipeline_mode<synchronous>, transform_indices = @transform_9, window_bounds = array<i64: 2, 1, 32>}, {pipeline_mode = #tpu.pipeline_mode<synchronous>, transform_indices = @transform_10, window_bounds = array<i64: 2, 1, 32>}, {pipeline_mode = #tpu.pipeline_mode<synchronous>, transform_indices = @transform_11, window_bounds = array<i64: 2, 32, 128>}, {pipeline_mode = #tpu.pipeline_mode<synchronous>, transform_indices = @transform_12, window_bounds = array<i64: 2, 1, 128>}, {pipeline_mode = #tpu.pipeline_mode<synchronous>, transform_indices = @transform_13, window_bounds = array<i64: 2, 128, 32>}, {pipeline_mode = #tpu.pipeline_mode<synchronous>, transform_indices = @transform_14, window_bounds = array<i64: 2, 1, 32>}, {pipeline_mode = #tpu.pipeline_mode<synchronous>, transform_indices = @transform_15, window_bounds = array<i64: 1, 32>}, {pipeline_mode = #tpu.pipeline_mode<synchronous>, transform_indices = @transform_16, window_bounds = array<i64: 1, 32>}, {pipeline_mode = #tpu.pipeline_mode<synchronous>, transform_indices = @transform_17, window_bounds = array<i64: 32, 128>}, {pipeline_mode = #tpu.pipeline_mode<synchronous>, transform_indices = @transform_18, window_bounds = array<i64: 1, 128>}, {pipeline_mode = #tpu.pipeline_mode<synchronous>, transform_indices = @transform_19, window_bounds = array<i64: 16, 128>}]} {
    %c0 = arith.constant 0 : index
    %c0_0 = arith.constant 0 : index
    %0 = vector.load %arg1[%c0, %c0_0] : memref<16x32xf32, #tpu.memory_space<vmem>>, vector<16x32xf32>
    %c0_1 = arith.constant 0 : index
    %c0_2 = arith.constant 0 : index
    %1 = vector.load %arg2[%c0_1, %c0_2] : memref<16x16xf32, #tpu.memory_space<vmem>>, vector<16x16xf32>
    %2 = vector.shape_cast %1 : vector<16x16xf32> to vector<1x16x16xf32>
    %3 = vector.shape_cast %2 : vector<1x16x16xf32> to vector<1x16x16xf32>
    %4 = vector.broadcast %3 : vector<1x16x16xf32> to vector<4x16x16xf32>
    %c0_3 = arith.constant 0 : index
    %c0_4 = arith.constant 0 : index
    %c0_5 = arith.constant 0 : index
    %5 = vector.load %arg3[%c0_3, %c0_4, %c0_5] : memref<2x1x32xf32, #tpu.memory_space<vmem>>, vector<1x1x32xf32>
    %6 = vector.shape_cast %5 : vector<1x1x32xf32> to vector<1x32xf32>
    %c0_6 = arith.constant 0 : index
    %c0_7 = arith.constant 0 : index
    %c0_8 = arith.constant 0 : index
    %7 = vector.load %arg4[%c0_6, %c0_7, %c0_8] : memref<2x1x32xf32, #tpu.memory_space<vmem>>, vector<1x1x32xf32>
    %8 = vector.shape_cast %7 : vector<1x1x32xf32> to vector<1x32xf32>
    %cst = arith.constant dense<0.000000e+00> : vector<16xf32>
    %9 = vector.multi_reduction <add>, %0, %cst [1] : vector<16x32xf32> to vector<16xf32>
    %10 = vector.shape_cast %9 : vector<16xf32> to vector<16x1xf32>
    %cst_9 = arith.constant 3.200000e+01 : f32
    %11 = vector.broadcast %cst_9 : f32 to vector<16x1xf32>
    %12 = arith.divf %10, %11 : vector<16x1xf32>
    %13 = vector.broadcast %12 : vector<16x1xf32> to vector<16x32xf32>
    %14 = arith.subf %0, %13 : vector<16x32xf32>
    %15 = arith.mulf %14, %14 : vector<16x32xf32>
    %cst_10 = arith.constant dense<0.000000e+00> : vector<16xf32>
    %16 = vector.multi_reduction <add>, %15, %cst_10 [1] : vector<16x32xf32> to vector<16xf32>
    %17 = vector.shape_cast %16 : vector<16xf32> to vector<16x1xf32>
    %cst_11 = arith.constant 3.200000e+01 : f32
    %18 = vector.broadcast %cst_11 : f32 to vector<16x1xf32>
    %19 = arith.divf %17, %18 : vector<16x1xf32>
    %20 = vector.broadcast %12 : vector<16x1xf32> to vector<16x32xf32>
    %21 = arith.subf %0, %20 : vector<16x32xf32>
    %cst_12 = arith.constant 9.99999974E-6 : f32
    %22 = vector.broadcast %cst_12 : f32 to vector<16x1xf32>
    %23 = arith.addf %19, %22 : vector<16x1xf32>
    %24 = math.rsqrt %23 : vector<16x1xf32>
    %25 = vector.broadcast %24 : vector<16x1xf32> to vector<16x32xf32>
    %26 = arith.mulf %21, %25 : vector<16x32xf32>
    %27 = vector.broadcast %6 : vector<1x32xf32> to vector<16x32xf32>
    %28 = arith.mulf %26, %27 : vector<16x32xf32>
    %29 = vector.broadcast %8 : vector<1x32xf32> to vector<16x32xf32>
    %30 = arith.addf %28, %29 : vector<16x32xf32>
    %31 = arith.truncf %30 : vector<16x32xf32> to vector<16x32xbf16>
    %32 = vector.shape_cast %31 : vector<16x32xbf16> to vector<1x16x32xbf16>
    %33 = vector.shape_cast %32 : vector<1x16x32xbf16> to vector<1x16x32xbf16>
    %34 = vector.broadcast %33 : vector<1x16x32xbf16> to vector<4x16x32xbf16>
    %c0_13 = arith.constant 0 : index
    %c0_14 = arith.constant 0 : index
    %c0_15 = arith.constant 0 : index
    %c0_16 = arith.constant 0 : index
    %35 = vector.load %arg5[%c0_13, %c0_14, %c0_15, %c0_16] : memref<2x4x32x8xbf16, #tpu.memory_space<vmem>>, vector<1x4x32x8xbf16>
    %36 = vector.shape_cast %35 : vector<1x4x32x8xbf16> to vector<4x32x8xbf16>
    "tpu.trace_start"() <{level = 10 : i32, message = "hne,hed->hnd"}> : () -> ()
    %cst_17 = arith.constant dense<0.000000e+00> : vector<4x16x8xf32>
    %37 = tpu.matmul %34, %36, %cst_17 {dimension_numbers = #tpu.dot_dimension_numbers<[2], [1], [1], [2], [0, 0, 0, 1, 1, 2], [0], [0]>} : vector<4x16x32xbf16>, vector<4x32x8xbf16>, vector<4x16x8xf32> -> vector<4x16x8xf32>
    "tpu.trace_stop"() : () -> ()
    %c0_18 = arith.constant 0 : index
    %c0_19 = arith.constant 0 : index
    %c0_20 = arith.constant 0 : index
    %c0_21 = arith.constant 0 : index
    %38 = vector.load %arg6[%c0_18, %c0_19, %c0_20, %c0_21] : memref<2x4x32x8xbf16, #tpu.memory_space<vmem>>, vector<1x4x32x8xbf16>
    %39 = vector.shape_cast %38 : vector<1x4x32x8xbf16> to vector<4x32x8xbf16>
    "tpu.trace_start"() <{level = 10 : i32, message = "hne,hed->hnd"}> : () -> ()
    %cst_22 = arith.constant dense<0.000000e+00> : vector<4x16x8xf32>
    %40 = tpu.matmul %34, %39, %cst_22 {dimension_numbers = #tpu.dot_dimension_numbers<[2], [1], [1], [2], [0, 0, 0, 1, 1, 2], [0], [0]>} : vector<4x16x32xbf16>, vector<4x32x8xbf16>, vector<4x16x8xf32> -> vector<4x16x8xf32>
    "tpu.trace_stop"() : () -> ()
    %c0_23 = arith.constant 0 : index
    %c0_24 = arith.constant 0 : index
    %c0_25 = arith.constant 0 : index
    %c0_26 = arith.constant 0 : index
    %41 = vector.load %arg7[%c0_23, %c0_24, %c0_25, %c0_26] : memref<2x4x32x8xbf16, #tpu.memory_space<vmem>>, vector<1x4x32x8xbf16>
    %42 = vector.shape_cast %41 : vector<1x4x32x8xbf16> to vector<4x32x8xbf16>
    "tpu.trace_start"() <{level = 10 : i32, message = "hne,hed->hnd"}> : () -> ()
    %cst_27 = arith.constant dense<0.000000e+00> : vector<4x16x8xf32>
    %43 = tpu.matmul %34, %42, %cst_27 {dimension_numbers = #tpu.dot_dimension_numbers<[2], [1], [1], [2], [0, 0, 0, 1, 1, 2], [0], [0]>} : vector<4x16x32xbf16>, vector<4x32x8xbf16>, vector<4x16x8xf32> -> vector<4x16x8xf32>
    "tpu.trace_stop"() : () -> ()
    %cst_28 = arith.constant 0.353553385 : f32
    %44 = vector.broadcast %cst_28 : f32 to vector<4x16x8xf32>
    %45 = arith.mulf %37, %44 : vector<4x16x8xf32>
    %46 = arith.truncf %45 : vector<4x16x8xf32> to vector<4x16x8xbf16>
    %47 = arith.truncf %40 : vector<4x16x8xf32> to vector<4x16x8xbf16>
    "tpu.trace_start"() <{level = 10 : i32, message = "hnd,hmd->hnm"}> : () -> ()
    %cst_29 = arith.constant dense<0.000000e+00> : vector<4x16x16xf32>
    %48 = tpu.matmul %46, %47, %cst_29 {dimension_numbers = #tpu.dot_dimension_numbers<[2], [2], [1], [1], [0, 0, 0, 1, 1, 1], [0], [0]>} : vector<4x16x8xbf16>, vector<4x16x8xbf16>, vector<4x16x16xf32> -> vector<4x16x16xf32>
    "tpu.trace_stop"() : () -> ()
    %49 = arith.addf %48, %4 : vector<4x16x16xf32>
    %cst_30 = arith.constant dense<0xFF800000> : vector<4x16xf32>
    %50 = vector.multi_reduction <maximumf>, %49, %cst_30 [2] : vector<4x16x16xf32> to vector<4x16xf32>
    %51 = vector.shape_cast %50 : vector<4x16xf32> to vector<4x16x1xf32>
    %52 = vector.broadcast %51 : vector<4x16x1xf32> to vector<4x16x16xf32>
    %53 = arith.subf %49, %52 : vector<4x16x16xf32>
    %54 = math.exp %53 : vector<4x16x16xf32>
    %cst_31 = arith.constant dense<0.000000e+00> : vector<4x16xf32>
    %55 = vector.multi_reduction <add>, %54, %cst_31 [2] : vector<4x16x16xf32> to vector<4x16xf32>
    %56 = vector.shape_cast %55 : vector<4x16xf32> to vector<4x16x1xf32>
    %57 = tpu.reciprocal %56 {approx = true} : vector<4x16x1xf32> -> vector<4x16x1xf32>
    %58 = vector.broadcast %57 : vector<4x16x1xf32> to vector<4x16x16xf32>
    %59 = arith.mulf %54, %58 : vector<4x16x16xf32>
    %60 = arith.truncf %59 : vector<4x16x16xf32> to vector<4x16x16xbf16>
    %61 = arith.truncf %43 : vector<4x16x8xf32> to vector<4x16x8xbf16>
    "tpu.trace_start"() <{level = 10 : i32, message = "hnm,hmd->hnd"}> : () -> ()
    %cst_32 = arith.constant dense<0.000000e+00> : vector<4x16x8xf32>
    %62 = tpu.matmul %60, %61, %cst_32 {dimension_numbers = #tpu.dot_dimension_numbers<[2], [1], [1], [2], [0, 0, 0, 1, 1, 2], [0], [0]>} : vector<4x16x16xbf16>, vector<4x16x8xbf16>, vector<4x16x8xf32> -> vector<4x16x8xf32>
    "tpu.trace_stop"() : () -> ()
    %63 = arith.truncf %62 : vector<4x16x8xf32> to vector<4x16x8xbf16>
    %c0_33 = arith.constant 0 : index
    %c0_34 = arith.constant 0 : index
    %c0_35 = arith.constant 0 : index
    %c0_36 = arith.constant 0 : index
    %64 = vector.load %arg8[%c0_33, %c0_34, %c0_35, %c0_36] : memref<2x4x8x32xbf16, #tpu.memory_space<vmem>>, vector<1x4x8x32xbf16>
    %65 = vector.shape_cast %64 : vector<1x4x8x32xbf16> to vector<4x8x32xbf16>
    "tpu.trace_start"() <{level = 10 : i32, message = "hnd,hde->hne"}> : () -> ()
    %cst_37 = arith.constant dense<0.000000e+00> : vector<4x16x32xf32>
    %66 = tpu.matmul %63, %65, %cst_37 {dimension_numbers = #tpu.dot_dimension_numbers<[2], [1], [1], [2], [0, 0, 0, 1, 1, 2], [0], [0]>} : vector<4x16x8xbf16>, vector<4x8x32xbf16>, vector<4x16x32xf32> -> vector<4x16x32xf32>
    "tpu.trace_stop"() : () -> ()
    %cst_38 = arith.constant dense<0.000000e+00> : vector<16x32xf32>
    %67 = vector.multi_reduction <add>, %66, %cst_38 [0] : vector<4x16x32xf32> to vector<16x32xf32>
    %c0_39 = arith.constant 0 : index
    %c0_40 = arith.constant 0 : index
    %c0_41 = arith.constant 0 : index
    %68 = vector.load %arg9[%c0_39, %c0_40, %c0_41] : memref<2x1x32xf32, #tpu.memory_space<vmem>>, vector<1x1x32xf32>
    %69 = vector.shape_cast %68 : vector<1x1x32xf32> to vector<1x32xf32>
    %70 = vector.broadcast %69 : vector<1x32xf32> to vector<16x32xf32>
    %71 = arith.addf %67, %70 : vector<16x32xf32>
    %72 = arith.addf %0, %71 : vector<16x32xf32>
    %c0_42 = arith.constant 0 : index
    %c0_43 = arith.constant 0 : index
    %c0_44 = arith.constant 0 : index
    %73 = vector.load %arg10[%c0_42, %c0_43, %c0_44] : memref<2x1x32xf32, #tpu.memory_space<vmem>>, vector<1x1x32xf32>
    %74 = vector.shape_cast %73 : vector<1x1x32xf32> to vector<1x32xf32>
    %c0_45 = arith.constant 0 : index
    %c0_46 = arith.constant 0 : index
    %c0_47 = arith.constant 0 : index
    %75 = vector.load %arg11[%c0_45, %c0_46, %c0_47] : memref<2x1x32xf32, #tpu.memory_space<vmem>>, vector<1x1x32xf32>
    %76 = vector.shape_cast %75 : vector<1x1x32xf32> to vector<1x32xf32>
    %cst_48 = arith.constant dense<0.000000e+00> : vector<16xf32>
    %77 = vector.multi_reduction <add>, %72, %cst_48 [1] : vector<16x32xf32> to vector<16xf32>
    %78 = vector.shape_cast %77 : vector<16xf32> to vector<16x1xf32>
    %cst_49 = arith.constant 3.200000e+01 : f32
    %79 = vector.broadcast %cst_49 : f32 to vector<16x1xf32>
    %80 = arith.divf %78, %79 : vector<16x1xf32>
    %81 = vector.broadcast %80 : vector<16x1xf32> to vector<16x32xf32>
    %82 = arith.subf %72, %81 : vector<16x32xf32>
    %83 = arith.mulf %82, %82 : vector<16x32xf32>
    %cst_50 = arith.constant dense<0.000000e+00> : vector<16xf32>
    %84 = vector.multi_reduction <add>, %83, %cst_50 [1] : vector<16x32xf32> to vector<16xf32>
    %85 = vector.shape_cast %84 : vector<16xf32> to vector<16x1xf32>
    %cst_51 = arith.constant 3.200000e+01 : f32
    %86 = vector.broadcast %cst_51 : f32 to vector<16x1xf32>
    %87 = arith.divf %85, %86 : vector<16x1xf32>
    %88 = vector.broadcast %80 : vector<16x1xf32> to vector<16x32xf32>
    %89 = arith.subf %72, %88 : vector<16x32xf32>
    %cst_52 = arith.constant 9.99999974E-6 : f32
    %90 = vector.broadcast %cst_52 : f32 to vector<16x1xf32>
    %91 = arith.addf %87, %90 : vector<16x1xf32>
    %92 = math.rsqrt %91 : vector<16x1xf32>
    %93 = vector.broadcast %92 : vector<16x1xf32> to vector<16x32xf32>
    %94 = arith.mulf %89, %93 : vector<16x32xf32>
    %95 = vector.broadcast %74 : vector<1x32xf32> to vector<16x32xf32>
    %96 = arith.mulf %94, %95 : vector<16x32xf32>
    %97 = vector.broadcast %76 : vector<1x32xf32> to vector<16x32xf32>
    %98 = arith.addf %96, %97 : vector<16x32xf32>
    %99 = arith.truncf %98 : vector<16x32xf32> to vector<16x32xbf16>
    %c0_53 = arith.constant 0 : index
    %c0_54 = arith.constant 0 : index
    %c0_55 = arith.constant 0 : index
    %100 = vector.load %arg12[%c0_53, %c0_54, %c0_55] : memref<2x32x128xbf16, #tpu.memory_space<vmem>>, vector<1x32x128xbf16>
    %101 = vector.shape_cast %100 : vector<1x32x128xbf16> to vector<32x128xbf16>
    %cst_56 = arith.constant dense<0.000000e+00> : vector<16x128xf32>
    %102 = tpu.matmul %99, %101, %cst_56 {dimension_numbers = #tpu.dot_dimension_numbers<[1], [0], [0], [1], [0, 0, 1, 1], [], []>} : vector<16x32xbf16>, vector<32x128xbf16>, vector<16x128xf32> -> vector<16x128xf32>
    %c0_57 = arith.constant 0 : index
    %c0_58 = arith.constant 0 : index
    %c0_59 = arith.constant 0 : index
    %103 = vector.load %arg13[%c0_57, %c0_58, %c0_59] : memref<2x1x128xf32, #tpu.memory_space<vmem>>, vector<1x1x128xf32>
    %104 = vector.shape_cast %103 : vector<1x1x128xf32> to vector<1x128xf32>
    %105 = vector.broadcast %104 : vector<1x128xf32> to vector<16x128xf32>
    %106 = arith.addf %102, %105 : vector<16x128xf32>
    %cst_60 = arith.constant 0.000000e+00 : f32
    %107 = vector.broadcast %cst_60 : f32 to vector<16x128xf32>
    %108 = arith.maximumf %106, %107 : vector<16x128xf32>
    %109 = arith.truncf %108 : vector<16x128xf32> to vector<16x128xbf16>
    %c0_61 = arith.constant 0 : index
    %c0_62 = arith.constant 0 : index
    %c0_63 = arith.constant 0 : index
    %110 = vector.load %arg14[%c0_61, %c0_62, %c0_63] : memref<2x128x32xbf16, #tpu.memory_space<vmem>>, vector<1x128x32xbf16>
    %111 = vector.shape_cast %110 : vector<1x128x32xbf16> to vector<128x32xbf16>
    %cst_64 = arith.constant dense<0.000000e+00> : vector<16x32xf32>
    %112 = tpu.matmul %109, %111, %cst_64 {dimension_numbers = #tpu.dot_dimension_numbers<[1], [0], [0], [1], [0, 0, 1, 1], [], []>} : vector<16x128xbf16>, vector<128x32xbf16>, vector<16x32xf32> -> vector<16x32xf32>
    %c0_65 = arith.constant 0 : index
    %c0_66 = arith.constant 0 : index
    %c0_67 = arith.constant 0 : index
    %113 = vector.load %arg15[%c0_65, %c0_66, %c0_67] : memref<2x1x32xf32, #tpu.memory_space<vmem>>, vector<1x1x32xf32>
    %114 = vector.shape_cast %113 : vector<1x1x32xf32> to vector<1x32xf32>
    %115 = vector.broadcast %114 : vector<1x32xf32> to vector<16x32xf32>
    %116 = arith.addf %112, %115 : vector<16x32xf32>
    %117 = arith.addf %72, %116 : vector<16x32xf32>
    %c1 = arith.constant 1 : index
    %c0_68 = arith.constant 0 : index
    %c0_69 = arith.constant 0 : index
    %118 = vector.load %arg3[%c1, %c0_68, %c0_69] : memref<2x1x32xf32, #tpu.memory_space<vmem>>, vector<1x1x32xf32>
    %119 = vector.shape_cast %118 : vector<1x1x32xf32> to vector<1x32xf32>
    %c1_70 = arith.constant 1 : index
    %c0_71 = arith.constant 0 : index
    %c0_72 = arith.constant 0 : index
    %120 = vector.load %arg4[%c1_70, %c0_71, %c0_72] : memref<2x1x32xf32, #tpu.memory_space<vmem>>, vector<1x1x32xf32>
    %121 = vector.shape_cast %120 : vector<1x1x32xf32> to vector<1x32xf32>
    %cst_73 = arith.constant dense<0.000000e+00> : vector<16xf32>
    %122 = vector.multi_reduction <add>, %117, %cst_73 [1] : vector<16x32xf32> to vector<16xf32>
    %123 = vector.shape_cast %122 : vector<16xf32> to vector<16x1xf32>
    %cst_74 = arith.constant 3.200000e+01 : f32
    %124 = vector.broadcast %cst_74 : f32 to vector<16x1xf32>
    %125 = arith.divf %123, %124 : vector<16x1xf32>
    %126 = vector.broadcast %125 : vector<16x1xf32> to vector<16x32xf32>
    %127 = arith.subf %117, %126 : vector<16x32xf32>
    %128 = arith.mulf %127, %127 : vector<16x32xf32>
    %cst_75 = arith.constant dense<0.000000e+00> : vector<16xf32>
    %129 = vector.multi_reduction <add>, %128, %cst_75 [1] : vector<16x32xf32> to vector<16xf32>
    %130 = vector.shape_cast %129 : vector<16xf32> to vector<16x1xf32>
    %cst_76 = arith.constant 3.200000e+01 : f32
    %131 = vector.broadcast %cst_76 : f32 to vector<16x1xf32>
    %132 = arith.divf %130, %131 : vector<16x1xf32>
    %133 = vector.broadcast %125 : vector<16x1xf32> to vector<16x32xf32>
    %134 = arith.subf %117, %133 : vector<16x32xf32>
    %cst_77 = arith.constant 9.99999974E-6 : f32
    %135 = vector.broadcast %cst_77 : f32 to vector<16x1xf32>
    %136 = arith.addf %132, %135 : vector<16x1xf32>
    %137 = math.rsqrt %136 : vector<16x1xf32>
    %138 = vector.broadcast %137 : vector<16x1xf32> to vector<16x32xf32>
    %139 = arith.mulf %134, %138 : vector<16x32xf32>
    %140 = vector.broadcast %119 : vector<1x32xf32> to vector<16x32xf32>
    %141 = arith.mulf %139, %140 : vector<16x32xf32>
    %142 = vector.broadcast %121 : vector<1x32xf32> to vector<16x32xf32>
    %143 = arith.addf %141, %142 : vector<16x32xf32>
    %144 = arith.truncf %143 : vector<16x32xf32> to vector<16x32xbf16>
    %145 = vector.shape_cast %144 : vector<16x32xbf16> to vector<1x16x32xbf16>
    %146 = vector.shape_cast %145 : vector<1x16x32xbf16> to vector<1x16x32xbf16>
    %147 = vector.broadcast %146 : vector<1x16x32xbf16> to vector<4x16x32xbf16>
    %c1_78 = arith.constant 1 : index
    %c0_79 = arith.constant 0 : index
    %c0_80 = arith.constant 0 : index
    %c0_81 = arith.constant 0 : index
    %148 = vector.load %arg5[%c1_78, %c0_79, %c0_80, %c0_81] : memref<2x4x32x8xbf16, #tpu.memory_space<vmem>>, vector<1x4x32x8xbf16>
    %149 = vector.shape_cast %148 : vector<1x4x32x8xbf16> to vector<4x32x8xbf16>
    "tpu.trace_start"() <{level = 10 : i32, message = "hne,hed->hnd"}> : () -> ()
    %cst_82 = arith.constant dense<0.000000e+00> : vector<4x16x8xf32>
    %150 = tpu.matmul %147, %149, %cst_82 {dimension_numbers = #tpu.dot_dimension_numbers<[2], [1], [1], [2], [0, 0, 0, 1, 1, 2], [0], [0]>} : vector<4x16x32xbf16>, vector<4x32x8xbf16>, vector<4x16x8xf32> -> vector<4x16x8xf32>
    "tpu.trace_stop"() : () -> ()
    %c1_83 = arith.constant 1 : index
    %c0_84 = arith.constant 0 : index
    %c0_85 = arith.constant 0 : index
    %c0_86 = arith.constant 0 : index
    %151 = vector.load %arg6[%c1_83, %c0_84, %c0_85, %c0_86] : memref<2x4x32x8xbf16, #tpu.memory_space<vmem>>, vector<1x4x32x8xbf16>
    %152 = vector.shape_cast %151 : vector<1x4x32x8xbf16> to vector<4x32x8xbf16>
    "tpu.trace_start"() <{level = 10 : i32, message = "hne,hed->hnd"}> : () -> ()
    %cst_87 = arith.constant dense<0.000000e+00> : vector<4x16x8xf32>
    %153 = tpu.matmul %147, %152, %cst_87 {dimension_numbers = #tpu.dot_dimension_numbers<[2], [1], [1], [2], [0, 0, 0, 1, 1, 2], [0], [0]>} : vector<4x16x32xbf16>, vector<4x32x8xbf16>, vector<4x16x8xf32> -> vector<4x16x8xf32>
    "tpu.trace_stop"() : () -> ()
    %c1_88 = arith.constant 1 : index
    %c0_89 = arith.constant 0 : index
    %c0_90 = arith.constant 0 : index
    %c0_91 = arith.constant 0 : index
    %154 = vector.load %arg7[%c1_88, %c0_89, %c0_90, %c0_91] : memref<2x4x32x8xbf16, #tpu.memory_space<vmem>>, vector<1x4x32x8xbf16>
    %155 = vector.shape_cast %154 : vector<1x4x32x8xbf16> to vector<4x32x8xbf16>
    "tpu.trace_start"() <{level = 10 : i32, message = "hne,hed->hnd"}> : () -> ()
    %cst_92 = arith.constant dense<0.000000e+00> : vector<4x16x8xf32>
    %156 = tpu.matmul %147, %155, %cst_92 {dimension_numbers = #tpu.dot_dimension_numbers<[2], [1], [1], [2], [0, 0, 0, 1, 1, 2], [0], [0]>} : vector<4x16x32xbf16>, vector<4x32x8xbf16>, vector<4x16x8xf32> -> vector<4x16x8xf32>
    "tpu.trace_stop"() : () -> ()
    %cst_93 = arith.constant 0.353553385 : f32
    %157 = vector.broadcast %cst_93 : f32 to vector<4x16x8xf32>
    %158 = arith.mulf %150, %157 : vector<4x16x8xf32>
    %159 = arith.truncf %158 : vector<4x16x8xf32> to vector<4x16x8xbf16>
    %160 = arith.truncf %153 : vector<4x16x8xf32> to vector<4x16x8xbf16>
    "tpu.trace_start"() <{level = 10 : i32, message = "hnd,hmd->hnm"}> : () -> ()
    %cst_94 = arith.constant dense<0.000000e+00> : vector<4x16x16xf32>
    %161 = tpu.matmul %159, %160, %cst_94 {dimension_numbers = #tpu.dot_dimension_numbers<[2], [2], [1], [1], [0, 0, 0, 1, 1, 1], [0], [0]>} : vector<4x16x8xbf16>, vector<4x16x8xbf16>, vector<4x16x16xf32> -> vector<4x16x16xf32>
    "tpu.trace_stop"() : () -> ()
    %162 = arith.addf %161, %4 : vector<4x16x16xf32>
    %cst_95 = arith.constant dense<0xFF800000> : vector<4x16xf32>
    %163 = vector.multi_reduction <maximumf>, %162, %cst_95 [2] : vector<4x16x16xf32> to vector<4x16xf32>
    %164 = vector.shape_cast %163 : vector<4x16xf32> to vector<4x16x1xf32>
    %165 = vector.broadcast %164 : vector<4x16x1xf32> to vector<4x16x16xf32>
    %166 = arith.subf %162, %165 : vector<4x16x16xf32>
    %167 = math.exp %166 : vector<4x16x16xf32>
    %cst_96 = arith.constant dense<0.000000e+00> : vector<4x16xf32>
    %168 = vector.multi_reduction <add>, %167, %cst_96 [2] : vector<4x16x16xf32> to vector<4x16xf32>
    %169 = vector.shape_cast %168 : vector<4x16xf32> to vector<4x16x1xf32>
    %170 = tpu.reciprocal %169 {approx = true} : vector<4x16x1xf32> -> vector<4x16x1xf32>
    %171 = vector.broadcast %170 : vector<4x16x1xf32> to vector<4x16x16xf32>
    %172 = arith.mulf %167, %171 : vector<4x16x16xf32>
    %173 = arith.truncf %172 : vector<4x16x16xf32> to vector<4x16x16xbf16>
    %174 = arith.truncf %156 : vector<4x16x8xf32> to vector<4x16x8xbf16>
    "tpu.trace_start"() <{level = 10 : i32, message = "hnm,hmd->hnd"}> : () -> ()
    %cst_97 = arith.constant dense<0.000000e+00> : vector<4x16x8xf32>
    %175 = tpu.matmul %173, %174, %cst_97 {dimension_numbers = #tpu.dot_dimension_numbers<[2], [1], [1], [2], [0, 0, 0, 1, 1, 2], [0], [0]>} : vector<4x16x16xbf16>, vector<4x16x8xbf16>, vector<4x16x8xf32> -> vector<4x16x8xf32>
    "tpu.trace_stop"() : () -> ()
    %176 = arith.truncf %175 : vector<4x16x8xf32> to vector<4x16x8xbf16>
    %c1_98 = arith.constant 1 : index
    %c0_99 = arith.constant 0 : index
    %c0_100 = arith.constant 0 : index
    %c0_101 = arith.constant 0 : index
    %177 = vector.load %arg8[%c1_98, %c0_99, %c0_100, %c0_101] : memref<2x4x8x32xbf16, #tpu.memory_space<vmem>>, vector<1x4x8x32xbf16>
    %178 = vector.shape_cast %177 : vector<1x4x8x32xbf16> to vector<4x8x32xbf16>
    "tpu.trace_start"() <{level = 10 : i32, message = "hnd,hde->hne"}> : () -> ()
    %cst_102 = arith.constant dense<0.000000e+00> : vector<4x16x32xf32>
    %179 = tpu.matmul %176, %178, %cst_102 {dimension_numbers = #tpu.dot_dimension_numbers<[2], [1], [1], [2], [0, 0, 0, 1, 1, 2], [0], [0]>} : vector<4x16x8xbf16>, vector<4x8x32xbf16>, vector<4x16x32xf32> -> vector<4x16x32xf32>
    "tpu.trace_stop"() : () -> ()
    %cst_103 = arith.constant dense<0.000000e+00> : vector<16x32xf32>
    %180 = vector.multi_reduction <add>, %179, %cst_103 [0] : vector<4x16x32xf32> to vector<16x32xf32>
    %c1_104 = arith.constant 1 : index
    %c0_105 = arith.constant 0 : index
    %c0_106 = arith.constant 0 : index
    %181 = vector.load %arg9[%c1_104, %c0_105, %c0_106] : memref<2x1x32xf32, #tpu.memory_space<vmem>>, vector<1x1x32xf32>
    %182 = vector.shape_cast %181 : vector<1x1x32xf32> to vector<1x32xf32>
    %183 = vector.broadcast %182 : vector<1x32xf32> to vector<16x32xf32>
    %184 = arith.addf %180, %183 : vector<16x32xf32>
    %185 = arith.addf %117, %184 : vector<16x32xf32>
    %c1_107 = arith.constant 1 : index
    %c0_108 = arith.constant 0 : index
    %c0_109 = arith.constant 0 : index
    %186 = vector.load %arg10[%c1_107, %c0_108, %c0_109] : memref<2x1x32xf32, #tpu.memory_space<vmem>>, vector<1x1x32xf32>
    %187 = vector.shape_cast %186 : vector<1x1x32xf32> to vector<1x32xf32>
    %c1_110 = arith.constant 1 : index
    %c0_111 = arith.constant 0 : index
    %c0_112 = arith.constant 0 : index
    %188 = vector.load %arg11[%c1_110, %c0_111, %c0_112] : memref<2x1x32xf32, #tpu.memory_space<vmem>>, vector<1x1x32xf32>
    %189 = vector.shape_cast %188 : vector<1x1x32xf32> to vector<1x32xf32>
    %cst_113 = arith.constant dense<0.000000e+00> : vector<16xf32>
    %190 = vector.multi_reduction <add>, %185, %cst_113 [1] : vector<16x32xf32> to vector<16xf32>
    %191 = vector.shape_cast %190 : vector<16xf32> to vector<16x1xf32>
    %cst_114 = arith.constant 3.200000e+01 : f32
    %192 = vector.broadcast %cst_114 : f32 to vector<16x1xf32>
    %193 = arith.divf %191, %192 : vector<16x1xf32>
    %194 = vector.broadcast %193 : vector<16x1xf32> to vector<16x32xf32>
    %195 = arith.subf %185, %194 : vector<16x32xf32>
    %196 = arith.mulf %195, %195 : vector<16x32xf32>
    %cst_115 = arith.constant dense<0.000000e+00> : vector<16xf32>
    %197 = vector.multi_reduction <add>, %196, %cst_115 [1] : vector<16x32xf32> to vector<16xf32>
    %198 = vector.shape_cast %197 : vector<16xf32> to vector<16x1xf32>
    %cst_116 = arith.constant 3.200000e+01 : f32
    %199 = vector.broadcast %cst_116 : f32 to vector<16x1xf32>
    %200 = arith.divf %198, %199 : vector<16x1xf32>
    %201 = vector.broadcast %193 : vector<16x1xf32> to vector<16x32xf32>
    %202 = arith.subf %185, %201 : vector<16x32xf32>
    %cst_117 = arith.constant 9.99999974E-6 : f32
    %203 = vector.broadcast %cst_117 : f32 to vector<16x1xf32>
    %204 = arith.addf %200, %203 : vector<16x1xf32>
    %205 = math.rsqrt %204 : vector<16x1xf32>
    %206 = vector.broadcast %205 : vector<16x1xf32> to vector<16x32xf32>
    %207 = arith.mulf %202, %206 : vector<16x32xf32>
    %208 = vector.broadcast %187 : vector<1x32xf32> to vector<16x32xf32>
    %209 = arith.mulf %207, %208 : vector<16x32xf32>
    %210 = vector.broadcast %189 : vector<1x32xf32> to vector<16x32xf32>
    %211 = arith.addf %209, %210 : vector<16x32xf32>
    %212 = arith.truncf %211 : vector<16x32xf32> to vector<16x32xbf16>
    %c1_118 = arith.constant 1 : index
    %c0_119 = arith.constant 0 : index
    %c0_120 = arith.constant 0 : index
    %213 = vector.load %arg12[%c1_118, %c0_119, %c0_120] : memref<2x32x128xbf16, #tpu.memory_space<vmem>>, vector<1x32x128xbf16>
    %214 = vector.shape_cast %213 : vector<1x32x128xbf16> to vector<32x128xbf16>
    %cst_121 = arith.constant dense<0.000000e+00> : vector<16x128xf32>
    %215 = tpu.matmul %212, %214, %cst_121 {dimension_numbers = #tpu.dot_dimension_numbers<[1], [0], [0], [1], [0, 0, 1, 1], [], []>} : vector<16x32xbf16>, vector<32x128xbf16>, vector<16x128xf32> -> vector<16x128xf32>
    %c1_122 = arith.constant 1 : index
    %c0_123 = arith.constant 0 : index
    %c0_124 = arith.constant 0 : index
    %216 = vector.load %arg13[%c1_122, %c0_123, %c0_124] : memref<2x1x128xf32, #tpu.memory_space<vmem>>, vector<1x1x128xf32>
    %217 = vector.shape_cast %216 : vector<1x1x128xf32> to vector<1x128xf32>
    %218 = vector.broadcast %217 : vector<1x128xf32> to vector<16x128xf32>
    %219 = arith.addf %215, %218 : vector<16x128xf32>
    %cst_125 = arith.constant 0.000000e+00 : f32
    %220 = vector.broadcast %cst_125 : f32 to vector<16x128xf32>
    %221 = arith.maximumf %219, %220 : vector<16x128xf32>
    %222 = arith.truncf %221 : vector<16x128xf32> to vector<16x128xbf16>
    %c1_126 = arith.constant 1 : index
    %c0_127 = arith.constant 0 : index
    %c0_128 = arith.constant 0 : index
    %223 = vector.load %arg14[%c1_126, %c0_127, %c0_128] : memref<2x128x32xbf16, #tpu.memory_space<vmem>>, vector<1x128x32xbf16>
    %224 = vector.shape_cast %223 : vector<1x128x32xbf16> to vector<128x32xbf16>
    %cst_129 = arith.constant dense<0.000000e+00> : vector<16x32xf32>
    %225 = tpu.matmul %222, %224, %cst_129 {dimension_numbers = #tpu.dot_dimension_numbers<[1], [0], [0], [1], [0, 0, 1, 1], [], []>} : vector<16x128xbf16>, vector<128x32xbf16>, vector<16x32xf32> -> vector<16x32xf32>
    %c1_130 = arith.constant 1 : index
    %c0_131 = arith.constant 0 : index
    %c0_132 = arith.constant 0 : index
    %226 = vector.load %arg15[%c1_130, %c0_131, %c0_132] : memref<2x1x32xf32, #tpu.memory_space<vmem>>, vector<1x1x32xf32>
    %227 = vector.shape_cast %226 : vector<1x1x32xf32> to vector<1x32xf32>
    %228 = vector.broadcast %227 : vector<1x32xf32> to vector<16x32xf32>
    %229 = arith.addf %225, %228 : vector<16x32xf32>
    %230 = arith.addf %185, %229 : vector<16x32xf32>
    %c0_133 = arith.constant 0 : index
    %c0_134 = arith.constant 0 : index
    %231 = vector.load %arg16[%c0_133, %c0_134] : memref<1x32xf32, #tpu.memory_space<vmem>>, vector<1x32xf32>
    %c0_135 = arith.constant 0 : index
    %c0_136 = arith.constant 0 : index
    %232 = vector.load %arg17[%c0_135, %c0_136] : memref<1x32xf32, #tpu.memory_space<vmem>>, vector<1x32xf32>
    %cst_137 = arith.constant dense<0.000000e+00> : vector<16xf32>
    %233 = vector.multi_reduction <add>, %230, %cst_137 [1] : vector<16x32xf32> to vector<16xf32>
    %234 = vector.shape_cast %233 : vector<16xf32> to vector<16x1xf32>
    %cst_138 = arith.constant 3.200000e+01 : f32
    %235 = vector.broadcast %cst_138 : f32 to vector<16x1xf32>
    %236 = arith.divf %234, %235 : vector<16x1xf32>
    %237 = vector.broadcast %236 : vector<16x1xf32> to vector<16x32xf32>
    %238 = arith.subf %230, %237 : vector<16x32xf32>
    %239 = arith.mulf %238, %238 : vector<16x32xf32>
    %cst_139 = arith.constant dense<0.000000e+00> : vector<16xf32>
    %240 = vector.multi_reduction <add>, %239, %cst_139 [1] : vector<16x32xf32> to vector<16xf32>
    %241 = vector.shape_cast %240 : vector<16xf32> to vector<16x1xf32>
    %cst_140 = arith.constant 3.200000e+01 : f32
    %242 = vector.broadcast %cst_140 : f32 to vector<16x1xf32>
    %243 = arith.divf %241, %242 : vector<16x1xf32>
    %244 = vector.broadcast %236 : vector<16x1xf32> to vector<16x32xf32>
    %245 = arith.subf %230, %244 : vector<16x32xf32>
    %cst_141 = arith.constant 9.99999974E-6 : f32
    %246 = vector.broadcast %cst_141 : f32 to vector<16x1xf32>
    %247 = arith.addf %243, %246 : vector<16x1xf32>
    %248 = math.rsqrt %247 : vector<16x1xf32>
    %249 = vector.broadcast %248 : vector<16x1xf32> to vector<16x32xf32>
    %250 = arith.mulf %245, %249 : vector<16x32xf32>
    %251 = vector.broadcast %231 : vector<1x32xf32> to vector<16x32xf32>
    %252 = arith.mulf %250, %251 : vector<16x32xf32>
    %253 = vector.broadcast %232 : vector<1x32xf32> to vector<16x32xf32>
    %254 = arith.addf %252, %253 : vector<16x32xf32>
    %255 = arith.truncf %254 : vector<16x32xf32> to vector<16x32xbf16>
    %c0_142 = arith.constant 0 : index
    %c0_143 = arith.constant 0 : index
    %256 = vector.load %arg18[%c0_142, %c0_143] : memref<32x128xbf16, #tpu.memory_space<vmem>>, vector<32x128xbf16>
    %cst_144 = arith.constant dense<0.000000e+00> : vector<16x128xf32>
    %257 = tpu.matmul %255, %256, %cst_144 {dimension_numbers = #tpu.dot_dimension_numbers<[1], [0], [0], [1], [0, 0, 1, 1], [], []>} : vector<16x32xbf16>, vector<32x128xbf16>, vector<16x128xf32> -> vector<16x128xf32>
    %c0_145 = arith.constant 0 : index
    %c0_146 = arith.constant 0 : index
    %258 = vector.load %arg19[%c0_145, %c0_146] : memref<1x128xf32, #tpu.memory_space<vmem>>, vector<1x128xf32>
    %259 = vector.broadcast %258 : vector<1x128xf32> to vector<16x128xf32>
    %260 = arith.addf %257, %259 : vector<16x128xf32>
    %c0_147 = arith.constant 0 : index
    %c0_148 = arith.constant 0 : index
    %261 = vector.load %arg20[%c0_147, %c0_148] : memref<16x128xf32, #tpu.memory_space<vmem>>, vector<16x128xf32>
    tpu.vector_store %arg20[%c0_147, %c0_148], %260 {strides = array<i32>} : memref<16x128xf32, #tpu.memory_space<vmem>>, vector<16x128xf32>,
    return
  }
  func.func @transform_0(%arg0: i32) -> (i32, i32) {
    %c0_i32 = arith.constant 0 : i32
    %c0_i32_0 = arith.constant 0 : i32
    %c0_i32_1 = arith.constant 0 : i32
    return %c0_i32, %c0_i32_0 : i32, i32
  }
  func.func @transform_1(%arg0: i32) -> (i32, i32) {
    %c0_i32 = arith.constant 0 : i32
    %c0_i32_0 = arith.constant 0 : i32
    %c0_i32_1 = arith.constant 0 : i32
    return %c0_i32, %c0_i32_0 : i32, i32
  }
  func.func @transform_2(%arg0: i32) -> (i32, i32, i32) {
    %c0_i32 = arith.constant 0 : i32
    %c0_i32_0 = arith.constant 0 : i32
    %c0_i32_1 = arith.constant 0 : i32
    %c0_i32_2 = arith.constant 0 : i32
    return %c0_i32, %c0_i32_0, %c0_i32_1 : i32, i32, i32
  }
  func.func @transform_3(%arg0: i32) -> (i32, i32, i32) {
    %c0_i32 = arith.constant 0 : i32
    %c0_i32_0 = arith.constant 0 : i32
    %c0_i32_1 = arith.constant 0 : i32
    %c0_i32_2 = arith.constant 0 : i32
    return %c0_i32, %c0_i32_0, %c0_i32_1 : i32, i32, i32
  }
  func.func @transform_4(%arg0: i32) -> (i32, i32, i32, i32) {
    %c0_i32 = arith.constant 0 : i32
    %c0_i32_0 = arith.constant 0 : i32
    %c0_i32_1 = arith.constant 0 : i32
    %c0_i32_2 = arith.constant 0 : i32
    %c0_i32_3 = arith.constant 0 : i32
    return %c0_i32, %c0_i32_0, %c0_i32_1, %c0_i32_2 : i32, i32, i32, i32
  }
  func.func @transform_5(%arg0: i32) -> (i32, i32, i32, i32) {
    %c0_i32 = arith.constant 0 : i32
    %c0_i32_0 = arith.constant 0 : i32
    %c0_i32_1 = arith.constant 0 : i32
    %c0_i32_2 = arith.constant 0 : i32
    %c0_i32_3 = arith.constant 0 : i32
    return %c0_i32, %c0_i32_0, %c0_i32_1, %c0_i32_2 : i32, i32, i32, i32
  }
  func.func @transform_6(%arg0: i32) -> (i32, i32, i32, i32) {
    %c0_i32 = arith.constant 0 : i32
    %c0_i32_0 = arith.constant 0 : i32
    %c0_i32_1 = arith.constant 0 : i32
    %c0_i32_2 = arith.constant 0 : i32
    %c0_i32_3 = arith.constant 0 : i32
    return %c0_i32, %c0_i32_0, %c0_i32_1, %c0_i32_2 : i32, i32, i32, i32
  }
  func.func @transform_7(%arg0: i32) -> (i32, i32, i32, i32) {
    %c0_i32 = arith.constant 0 : i32
    %c0_i32_0 = arith.constant 0 : i32
    %c0_i32_1 = arith.constant 0 : i32
    %c0_i32_2 = arith.constant 0 : i32
    %c0_i32_3 = arith.constant 0 : i32
    return %c0_i32, %c0_i32_0, %c0_i32_1, %c0_i32_2 : i32, i32, i32, i32
  }
  func.func @transform_8(%arg0: i32) -> (i32, i32, i32) {
    %c0_i32 = arith.constant 0 : i32
    %c0_i32_0 = arith.constant 0 : i32
    %c0_i32_1 = arith.constant 0 : i32
    %c0_i32_2 = arith.constant 0 : i32
    return %c0_i32, %c0_i32_0, %c0_i32_1 : i32, i32, i32
  }
  func.func @transform_9(%arg0: i32) -> (i32, i32, i32) {
    %c0_i32 = arith.constant 0 : i32
    %c0_i32_0 = arith.constant 0 : i32
    %c0_i32_1 = arith.constant 0 : i32
    %c0_i32_2 = arith.constant 0 : i32
    return %c0_i32, %c0_i32_0, %c0_i32_1 : i32, i32, i32
  }
  func.func @transform_10(%arg0: i32) -> (i32, i32, i32) {
    %c0_i32 = arith.constant 0 : i32
    %c0_i32_0 = arith.constant 0 : i32
    %c0_i32_1 = arith.constant 0 : i32
    %c0_i32_2 = arith.constant 0 : i32
    return %c0_i32, %c0_i32_0, %c0_i32_1 : i32, i32, i32
  }
  func.func @transform_11(%arg0: i32) -> (i32, i32, i32) {
    %c0_i32 = arith.constant 0 : i32
    %c0_i32_0 = arith.constant 0 : i32
    %c0_i32_1 = arith.constant 0 : i32
    %c0_i32_2 = arith.constant 0 : i32
    return %c0_i32, %c0_i32_0, %c0_i32_1 : i32, i32, i32
  }
  func.func @transform_12(%arg0: i32) -> (i32, i32, i32) {
    %c0_i32 = arith.constant 0 : i32
    %c0_i32_0 = arith.constant 0 : i32
    %c0_i32_1 = arith.constant 0 : i32
    %c0_i32_2 = arith.constant 0 : i32
    return %c0_i32, %c0_i32_0, %c0_i32_1 : i32, i32, i32
  }
  func.func @transform_13(%arg0: i32) -> (i32, i32, i32) {
    %c0_i32 = arith.constant 0 : i32
    %c0_i32_0 = arith.constant 0 : i32
    %c0_i32_1 = arith.constant 0 : i32
    %c0_i32_2 = arith.constant 0 : i32
    return %c0_i32, %c0_i32_0, %c0_i32_1 : i32, i32, i32
  }
  func.func @transform_14(%arg0: i32) -> (i32, i32, i32) {
    %c0_i32 = arith.constant 0 : i32
    %c0_i32_0 = arith.constant 0 : i32
    %c0_i32_1 = arith.constant 0 : i32
    %c0_i32_2 = arith.constant 0 : i32
    return %c0_i32, %c0_i32_0, %c0_i32_1 : i32, i32, i32
  }
  func.func @transform_15(%arg0: i32) -> (i32, i32) {
    %c0_i32 = arith.constant 0 : i32
    %c0_i32_0 = arith.constant 0 : i32
    %c0_i32_1 = arith.constant 0 : i32
    return %c0_i32, %c0_i32_0 : i32, i32
  }
  func.func @transform_16(%arg0: i32) -> (i32, i32) {
    %c0_i32 = arith.constant 0 : i32
    %c0_i32_0 = arith.constant 0 : i32
    %c0_i32_1 = arith.constant 0 : i32
    return %c0_i32, %c0_i32_0 : i32, i32
  }
  func.func @transform_17(%arg0: i32) -> (i32, i32) {
    %c0_i32 = arith.constant 0 : i32
    %c0_i32_0 = arith.constant 0 : i32
    %c0_i32_1 = arith.constant 0 : i32
    return %c0_i32, %c0_i32_0 : i32, i32
  }
  func.func @transform_18(%arg0: i32) -> (i32, i32) {
    %c0_i32 = arith.constant 0 : i32
    %c0_i32_0 = arith.constant 0 : i32
    %c0_i32_1 = arith.constant 0 : i32
    return %c0_i32, %c0_i32_0 : i32, i32
  }
  func.func @transform_19(%arg0: i32) -> (i32, i32) {
    %c0_i32 = arith.constant 0 : i32
    %c0_i32_0 = arith.constant 0 : i32
    %c0_i32_1 = arith.constant 0 : i32
    return %c0_i32, %c0_i32_0 : i32, i32
  }
}

</mosaic_0001>

<bundles_post_ra>
// kernel: tpu_custom_call.1
= control target key start
LH: loop header
LB: loop body
LE: loop exit
PB: predicated region body
PF: predicated region fallthrough
CT: control target
= control target key end

     0   :  { %s5338_s0 = inlined_call_operand.vmem [shape: f32[16,32], index: 0, kind: input, shape index: {}]   ;;  %s5339_s1 = inlined_call_operand.vmem [shape: f32[16,16], index: 1, kind: input, shape index: {}]   ;;  %s5340_s2 = inlined_call_operand.vmem [shape: f32[2,1,32], index: 2, kind: input, shape index: {}]   ;;  %s5341_s3 = inlined_call_operand.vmem [shape: f32[2,1,32], index: 3, kind: input, shape index: {}]   ;;  %s5342_s4 = inlined_call_operand.vmem [shape: bf16[2,4,32,8], index: 4, kind: input, shape index: {}]   ;;  %s5343_s5 = inlined_call_operand.vmem [shape: bf16[2,4,32,8], index: 5, kind: input, shape index: {}]   ;;  %s5344_s6 = inlined_call_operand.vmem [shape: bf16[2,4,32,8], index: 6, kind: input, shape index: {}]   ;;  %s5345_s7 = inlined_call_operand.vmem [shape: bf16[2,4,8,32], index: 7, kind: input, shape index: {}]   ;;  %s5346_s8 = inlined_call_operand.vmem [shape: f32[2,1,32], index: 8, kind: input, shape index: {}]   ;;  %s5347_s9 = inlined_call_operand.vmem [shape: f32[2,1,32], index: 9, kind: input, shape index: {}]   ;;  %s5348_s10 = inlined_call_operand.vmem [shape: f32[2,1,32], index: 10, kind: input, shape index: {}]   ;;  %s5349_s11 = inlined_call_operand.vmem [shape: bf16[2,32,128], index: 11, kind: input, shape index: {}]   ;;  %s5350_s12 = inlined_call_operand.vmem [shape: f32[2,1,128], index: 12, kind: input, shape index: {}]   ;;  %s5351_s13 = inlined_call_operand.vmem [shape: bf16[2,128,32], index: 13, kind: input, shape index: {}]   ;;  %s5352_s14 = inlined_call_operand.vmem [shape: f32[2,1,32], index: 14, kind: input, shape index: {}]   ;;  %s5353_s15 = inlined_call_operand.vmem [shape: f32[1,32], index: 15, kind: input, shape index: {}]   ;;  %s5354_s16 = inlined_call_operand.vmem [shape: f32[1,32], index: 16, kind: input, shape index: {}]   ;;  %s5355_s17 = inlined_call_operand.vmem [shape: bf16[32,128], index: 17, kind: input, shape index: {}]   ;;  %s5356_s18 = inlined_call_operand.vmem [shape: f32[1,128], index: 18, kind: input, shape index: {}]   ;;  %s5357_s19 = inlined_call_operand.hbm [shape: f32[16,128], index: 19, kind: output, shape index: {}]  }
   0x1   :  { %5362 = sst [smem:[#allocation5_spill]] %s5338_s0 }
   0x2   :  { %5363 = sst [smem:[#allocation6_spill]] %s5339_s1 }
   0x3   :  { %5364 = sst [smem:[#allocation7_spill]] %s5340_s2 }
   0x4   :  { %5365 = sst [smem:[#allocation8_spill]] %s5341_s3 }
   0x5   :  { %s5366_s20 = sld [smem:[#allocation5_spill]]  ;;  %vm70_vm0 = vcmask 261120  }
   0xb   :  { %v64_v0 = vld [vmem:[%s5366_s20] sm:$0xff]  ;;  %v65_v1 = vld [vmem:[%s5366_s20 + $0x8] sm:$0xff] }
   0xc   :  { %v71_v2 = vsel %vm70_vm0, %v64_v0, 0.0  ;;  %v74_v3 = vsel %vm70_vm0, %v65_v1, 0.0 }
   0xd   :  { %72 = vadd.xlane.f32.xlu0 %v71_v2 }
  0x11   :  { %75 = vadd.xlane.f32.xlu0 %v74_v3 }
  0x12   :  { %24 = vsyncpa [#allocation3], 0  ;;  %v4301_v14 = vld [vmem:[%s5342_s4] sm:$0xff]   ;;  %v4483_v16 = vmov 0.0   ;;  %v4303_v17 = vld [vmem:[%s5342_s4 + $0x8] sm:$0xff]   ;;  %vm4484_vm1 = vmmov 0  }
  0x13   :  { %v4302_v15 = vld [vmem:[%s5342_s4 + $0x20] sm:$0xff]   ;;  %3896 = vmatprep.subr.bf16.mxu1 %v4483_v16  ;;  %3912 = vmatprep.subr.bf16.mxu0 %v4483_v16  ;;  %v4304_v18 = vld [vmem:[%s5342_s4 + $0x28] sm:$0xff]   ;;  %s5367_s0 = sld [smem:[#allocation7_spill]]  ;;  %s5368_s1 = sld [smem:[#allocation8_spill]]  ;;  %v4305_v35 = vld [vmem:[%s5342_s4 + $0x10] sm:$0xff]   ;;  %vm818_vm2 = vcmask 64512  }
  0x14   :  { %3897 = vmatpush3.bf16.msra.mxu1 %v4301_v14  ;;  %3913 = vmatpush3.bf16.msra.mxu0 %v4302_v15  ;;  %v4306_v36 = vld [vmem:[%s5343_s5] sm:$0xff]   ;;  %v4307_v38 = vld [vmem:[%s5342_s4 + $0x18] sm:$0xff]   ;;  %v4308_v39 = vld [vmem:[%s5343_s5 + $0x8] sm:$0xff]   ;;  %s5369_s26 = sld [smem:[#allocation6_spill]]  ;;  %vm1007_vm3 = vcmask 130048   ;;  %vm1291_vm4 = vcmask 1043456  }
  0x15   :  { %3898 = vmatprep.subr.bf16.mxu1 %v4483_v16  ;;  %3914 = vmatprep.subr.bf16.mxu0 %v4483_v16  ;;  %v4309_v40 = vld [vmem:[%s5342_s4 + $0x30] sm:$0xff]   ;;  %v4310_v41 = vld [vmem:[%s5343_s5 + $0x20] sm:$0xff]   ;;  %v4311_v42 = vld [vmem:[%s5342_s4 + $0x38] sm:$0xff]  }
  0x16   :  { %3900 = vmatprep.mubr.msk.bf16.mxu1 %vm4484_vm1, %v4483_v16  ;;  %3916 = vmatprep.mubr.msk.bf16.mxu0 %vm4484_vm1, %v4483_v16  ;;  %v4312_v43 = vld [vmem:[%s5343_s5 + $0x28] sm:$0xff]   ;;  %v4313_v44 = vld [vmem:[%s5343_s5 + $0x10] sm:$0xff]   ;;  %v4314_v45 = vld [vmem:[%s5344_s6] sm:$0xff]  }
  0x17   :  { %v4315_v46 = vld [vmem:[%s5343_s5 + $0x18] sm:$0xff]   ;;  %v4316_v47 = vld [vmem:[%s5344_s6 + $0x8] sm:$0xff]   ;;  %v4317_v48 = vld [vmem:[%s5343_s5 + $0x30] sm:$0xff]  }
  0x18   :  { %3899 = vmatpush3.bf16.msra.mxu1 %v4303_v17  ;;  %3915 = vmatpush3.bf16.msra.mxu0 %v4304_v18  ;;  %v4318_v49 = vld [vmem:[%s5344_s6 + $0x20] sm:$0xff]   ;;  %v4319_v50 = vld [vmem:[%s5343_s5 + $0x38] sm:$0xff]   ;;  %v4320_v51 = vld [vmem:[%s5344_s6 + $0x28] sm:$0xff]  }
  0x19   :  { %3904 = vmatprep.subr.bf16.mxu1 %v4483_v16  ;;  %3928 = vmatprep.subr.bf16.mxu0 %v4483_v16  ;;  %v3532_v27 = vld [vmem:[%s5367_s0] ss:$0 sm:$0xff]  ;;  %v4321_v52 = vld [vmem:[%s5344_s6 + $0x10] sm:$0xff]   ;;  %v4322_v53 = vld [vmem:[%s5344_s6 + $0x18] sm:$0xff]  }
  0x1a   :  { %v3533_v31 = vld [vmem:[%s5368_s1] ss:$0 sm:$0xff]  ;;  %v4323_v54 = vld [vmem:[%s5344_s6 + $0x30] sm:$0xff]   ;;  %v4324_v55 = vld [vmem:[%s5344_s6 + $0x38] sm:$0xff]  }
  0x9a   :  { %v73_v4 = vpop.xlane.xlu0 %72 }
  0x9b   :  { %v78_v5 = vmul.f32 0.03125, %v73_v4 }
  0x9d   :  { %v80_v6 = vsub.f32 %v64_v0, %v78_v5 }
  0x9e   :  { %v76_v7 = vpop.xlane.xlu0 %75 }
  0x9f   :  { %v79_v8 = vmul.f32 0.03125, %v76_v7  ;;  %v82_v9 = vmul.f32 %v80_v6, %v80_v6 }
  0xa1   :  { %v81_v10 = vsub.f32 %v65_v1, %v79_v8  ;;  %v84_v11 = vsel %vm70_vm0, %v82_v9, 0.0 }
  0xa2   :  { %85 = vadd.xlane.f32.xlu1 %v84_v11 }
  0xa3   :  { %v83_v12 = vmul.f32 %v81_v10, %v81_v10 }
  0xa5   :  { %v87_v13 = vsel %vm70_vm0, %v83_v12, 0.0 }
  0xa6   :  { %88 = vadd.xlane.f32.xlu1 %v87_v13 }
 0x12f   :  { %v86_v19 = vpop.xlane.xlu1 %85 }
 0x130   :  { %v90_v20 = vmul.f32 0.03125, %v86_v19 }
 0x132   :  { %v92_v21 = vadd.f32 1e-05, %v90_v20 }
 0x133   :  { %v89_v22 = vpop.xlane.xlu1 %88 }
 0x134   :  { %4371 = vrsqrt.f32 %v92_v21  ;;  %v91_v23 = vmul.f32 0.03125, %v89_v22 }
 0x136   :  { %v93_v24 = vadd.f32 1e-05, %v91_v23 }
 0x138   :  { %4373 = vrsqrt.f32 %v93_v24 }
 0x13e   :  { %v4372_v25 = vpop.eup %4371 }
 0x13f   :  { %v96_v26 = vmul.f32 %v4372_v25, %v80_v6 }
 0x141   :  { %v104_v29 = vmul.f32 %v3532_v27, %v96_v26 }
 0x142   :  { %v4374_v28 = vpop.eup %4373 }
 0x143   :  { %v97_v30 = vmul.f32 %v4374_v28, %v81_v10  ;;  %v112_v33 = vadd.f32 %v3533_v31, %v104_v29 }
 0x145   :  { %v105_v32 = vmul.f32 %v3532_v27, %v97_v30 }
 0x147   :  { %v113_v34 = vadd.f32 %v3533_v31, %v105_v32 }
 0x149   :  { %v4632_v37 = vpack.c.bf16 %v113_v34, %v112_v33 }
 0x14b   :  { %3901 = vmatmul.mubr.msk.bf16.vlgmr.msra.gmra.mrb[0].mxu1 %vm70_vm0, %v4632_v37  ;;  %3917 = vmatmul.mubr.msk.bf16.vlgmr.msra.gmra.mrb[0].mxu0 %vm70_vm0, %v4632_v37 }
 0x14c   :  { %3905 = vmatpush3.bf16.msra.mxu1 %v4305_v35  ;;  %3929 = vmatpush3.bf16.msra.mxu0 %v4306_v36 }
 0x14d   :  { %3906 = vmatprep.subr.bf16.mxu1 %v4483_v16  ;;  %3930 = vmatprep.subr.bf16.mxu0 %v4483_v16 }
 0x14e   :  { %3908 = vmatprep.mubr.msk.bf16.mxu1 %vm4484_vm1, %v4483_v16  ;;  %3932 = vmatprep.mubr.msk.bf16.mxu0 %vm4484_vm1, %v4483_v16 }
 0x150   :  { %3907 = vmatpush3.bf16.msra.mxu1 %v4307_v38  ;;  %3931 = vmatpush3.bf16.msra.mxu0 %v4308_v39 }
 0x151   :  { %3920 = vmatprep.subr.bf16.mxu1 %v4483_v16  ;;  %3944 = vmatprep.subr.bf16.mxu0 %v4483_v16 }
 0x153   :  { %3909 = vmatmul.mubr.msk.bf16.vlgmr.msra.gmra.mrb[4].mxu1 %vm70_vm0, %v4632_v37  ;;  %3933 = vmatmul.mubr.msk.bf16.vlgmr.msra.gmra.mrb[4].mxu0 %vm70_vm0, %v4632_v37 }
 0x154   :  { %3921 = vmatpush3.bf16.msra.mxu1 %v4309_v40  ;;  %3945 = vmatpush3.bf16.msra.mxu0 %v4310_v41 }
 0x155   :  { %3922 = vmatprep.subr.bf16.mxu1 %v4483_v16  ;;  %3946 = vmatprep.subr.bf16.mxu0 %v4483_v16 }
 0x156   :  { %3924 = vmatprep.mubr.msk.bf16.mxu1 %vm4484_vm1, %v4483_v16  ;;  %3948 = vmatprep.mubr.msk.bf16.mxu0 %vm4484_vm1, %v4483_v16 }
 0x158   :  { %3923 = vmatpush3.bf16.msra.mxu1 %v4311_v42  ;;  %3947 = vmatpush3.bf16.msra.mxu0 %v4312_v43 }
 0x159   :  { %3936 = vmatprep.subr.bf16.mxu1 %v4483_v16  ;;  %3960 = vmatprep.subr.bf16.mxu0 %v4483_v16 }
 0x15b   :  { %3925 = vmatmul.mubr.msk.bf16.vlgmr.msra.gmra.mrb[8].mxu1 %vm70_vm0, %v4632_v37  ;;  %3949 = vmatmul.mubr.msk.bf16.vlgmr.msra.gmra.mrb[8].mxu0 %vm70_vm0, %v4632_v37 }
 0x15c   :  { %3937 = vmatpush3.bf16.msra.mxu1 %v4313_v44  ;;  %3961 = vmatpush3.bf16.msra.mxu0 %v4314_v45 }
 0x15d   :  { %3938 = vmatprep.subr.bf16.mxu1 %v4483_v16  ;;  %3962 = vmatprep.subr.bf16.mxu0 %v4483_v16 }
 0x15e   :  { %3940 = vmatprep.mubr.msk.bf16.mxu1 %vm4484_vm1, %v4483_v16  ;;  %3964 = vmatprep.mubr.msk.bf16.mxu0 %vm4484_vm1, %v4483_v16 }
 0x160   :  { %3939 = vmatpush3.bf16.msra.mxu1 %v4315_v46  ;;  %3963 = vmatpush3.bf16.msra.mxu0 %v4316_v47 }
 0x161   :  { %3952 = vmatprep.subr.bf16.mxu1 %v4483_v16  ;;  %3976 = vmatprep.subr.bf16.mxu0 %v4483_v16 }
 0x163   :  { %3941 = vmatmul.mubr.msk.bf16.vlgmr.msra.gmra.mrb[12].mxu1 %vm70_vm0, %v4632_v37  ;;  %3965 = vmatmul.mubr.msk.bf16.vlgmr.msra.gmra.mrb[12].mxu0 %vm70_vm0, %v4632_v37 }
 0x164   :  { %3953 = vmatpush3.bf16.msra.mxu1 %v4317_v48  ;;  %3977 = vmatpush3.bf16.msra.mxu0 %v4318_v49 }
 0x165   :  { %3954 = vmatprep.subr.bf16.mxu1 %v4483_v16  ;;  %3978 = vmatprep.subr.bf16.mxu0 %v4483_v16 }
 0x166   :  { %3956 = vmatprep.mubr.msk.bf16.mxu1 %vm4484_vm1, %v4483_v16  ;;  %3980 = vmatprep.mubr.msk.bf16.mxu0 %vm4484_vm1, %v4483_v16 }
 0x168   :  { %3955 = vmatpush3.bf16.msra.mxu1 %v4319_v50  ;;  %3979 = vmatpush3.bf16.msra.mxu0 %v4320_v51 }
 0x169   :  { %3968 = vmatprep.subr.bf16.mxu1 %v4483_v16  ;;  %3992 = vmatprep.subr.bf16.mxu0 %v4483_v16 }
 0x16b   :  { %3957 = vmatmul.mubr.msk.bf16.vlgmr.msra.gmra.mrb[16].mxu1 %vm70_vm0, %v4632_v37  ;;  %3981 = vmatmul.mubr.msk.bf16.vlgmr.msra.gmra.mrb[16].mxu0 %vm70_vm0, %v4632_v37 }
 0x16c   :  { %3969 = vmatpush3.bf16.msra.mxu1 %v4321_v52  ;;  %3972 = vmatprep.mubr.msk.bf16.mxu1 %vm4484_vm1, %v4483_v16 }
 0x16d   :  { %3970 = vmatprep.subr.bf16.mxu1 %v4483_v16  ;;  %3994 = vmatprep.mubr.msk.bf16.mxu0 %vm4484_vm1, %v4483_v16 }
 0x170   :  { %3971 = vmatpush3.bf16.msra.mxu1 %v4322_v53 }
 0x171   :  { %3984 = vmatprep.subr.bf16.mxu1 %v4483_v16 }
 0x173   :  { %3973 = vmatmul.mubr.msk.bf16.vlgmr.msra.gmra.mrb[20].mxu1 %vm70_vm0, %v4632_v37 }
 0x174   :  { %3985 = vmatpush3.bf16.msra.mxu1 %v4323_v54  ;;  %3988 = vmatprep.mubr.msk.bf16.mxu1 %vm4484_vm1, %v4483_v16 }
 0x175   :  { %3986 = vmatprep.subr.bf16.mxu1 %v4483_v16 }
 0x178   :  { %3987 = vmatpush3.bf16.msra.mxu1 %v4324_v55 }
 0x179   :  { %3998 = vmatprep.subr.bf16.mxu1 %v4483_v16 }
 0x17b   :  { %3989 = vmatmul.mubr.msk.bf16.vlgmr.msra.gmra.mrb[24].mxu1 %vm70_vm0, %v4632_v37 }
 0x17c   :  { %4000 = vmatprep.mubr.msk.bf16.mxu1 %vm4484_vm1, %v4483_v16 }
 0x21e   :  { %v180_v56 = vpop.f32.mrb[0].mxu1  ;;  %v286_v57 = vpop.f32.mrb[0].mxu0 }
 0x21f   :  { %v3902_v58 = vpop.f32.mrb[1].mxu1  ;;  %v3918_v59 = vpop.f32.mrb[1].mxu0  ;;  %v802_v60 = vmul.f32 0.35355338, %v180_v56  ;;  %v806_v61 = vmul.f32 0.35355338, %v286_v57 }
 0x220   :  { %v183_v62 = vpop.f32.mrb[2].mxu1  ;;  %v289_v63 = vpop.f32.mrb[2].mxu0 }
 0x221   :  { %v803_v0 = vmul.f32 0.35355338, %v183_v62  ;;  %v807_v1 = vmul.f32 0.35355338, %v289_v63  ;;  %v3903_v2 = vpop.f32.mrb[3].mxu1  ;;  %v3919_v3 = vpop.f32.mrb[3].mxu0 }
 0x222   :  { %v67_v3 = vld [vmem:[%s5369_s26 + $0x8] sm:$0xff] }
 0x223   :  { %v810_v4 = vpack.c.bf16 %v803_v0, %v802_v60  ;;  %v812_v5 = vpack.c.bf16 %v807_v1, %v806_v61  ;;  %v66_v1 = vld [vmem:[%s5369_s26] sm:$0xff] }
 0x226   :  { %v233_v6 = vpop.f32.mrb[4].mxu1  ;;  %v408_v7 = vpop.f32.mrb[4].mxu0 }
 0x227   :  { %v3910_v8 = vpop.f32.mrb[5].mxu1  ;;  %v3934_v9 = vpop.f32.mrb[5].mxu0  ;;  %v804_v12 = vmul.f32 0.35355338, %v233_v6 }
 0x228   :  { %v236_v10 = vpop.f32.mrb[6].mxu1  ;;  %v411_v11 = vpop.f32.mrb[6].mxu0 }
 0x229   :  { %v805_v13 = vmul.f32 0.35355338, %v236_v10  ;;  %v814_v14 = vpack.c.bf16 %v411_v11, %v408_v7  ;;  %v3911_v15 = vpop.f32.mrb[7].mxu1  ;;  %v3935_v17 = vpop.f32.mrb[7].mxu0 }
 0x22b   :  { %v811_v18 = vpack.c.bf16 %v805_v13, %v804_v12  ;;  %v823_v19 = vsel %vm818_vm2, %v814_v14, 0 }
 0x22c   :  { %3993 = vmatpush3.bf16.xpose.msra.mxu0 %v823_v19 }
 0x22d   :  { %4004 = vmatprep.subr.bf16.mxu0 %v4483_v16 }
 0x22e   :  { %v339_v20 = vpop.f32.mrb[8].mxu1  ;;  %v514_v21 = vpop.f32.mrb[8].mxu0 }
 0x22f   :  { %v3926_v22 = vpop.f32.mrb[9].mxu1  ;;  %v3950_v23 = vpop.f32.mrb[9].mxu0  ;;  %v808_v26 = vmul.f32 0.35355338, %v339_v20 }
 0x230   :  { %v342_v24 = vpop.f32.mrb[10].mxu1  ;;  %v517_v25 = vpop.f32.mrb[10].mxu0 }
 0x231   :  { %v809_v27 = vmul.f32 0.35355338, %v342_v24  ;;  %v816_v28 = vpack.c.bf16 %v517_v25, %v514_v21  ;;  %v3927_v29 = vpop.f32.mrb[11].mxu1  ;;  %v3951_v30 = vpop.f32.mrb[11].mxu0 }
 0x233   :  { %v813_v31 = vpack.c.bf16 %v809_v27, %v808_v26  ;;  %v917_v32 = vsel %vm818_vm2, %v816_v28, 0  ;;  %3995 = vmatmul.mubr.msk.bf16.vlgmr.msra.gmra.mrb[20].mxu0 %vm818_vm2, %v810_v4 }
 0x234   :  { %4005 = vmatpush3.bf16.xpose.msra.mxu0 %v917_v32  ;;  %4006 = vmatprep.mubr.msk.bf16.mxu0 %vm4484_vm1, %v4483_v16 }
 0x235   :  { %4016 = vmatprep.subr.bf16.mxu0 %v4483_v16 }
 0x236   :  { %v461_v33 = vpop.f32.mrb[12].mxu1  ;;  %v636_v34 = vpop.f32.mrb[12].mxu0 }
 0x237   :  { %v3942_v35 = vpop.f32.mrb[13].mxu1  ;;  %v3966_v36 = vpop.f32.mrb[13].mxu0 }
 0x238   :  { %v464_v37 = vpop.f32.mrb[14].mxu1  ;;  %v639_v38 = vpop.f32.mrb[14].mxu0 }
 0x239   :  { %v815_v39 = vpack.c.bf16 %v464_v37, %v461_v33  ;;  %v1100_v40 = vpack.c.bf16 %v639_v38, %v636_v34  ;;  %v3943_v41 = vpop.f32.mrb[15].mxu1  ;;  %v3967_v42 = vpop.f32.mrb[15].mxu0 }
 0x23b   :  { %v870_v43 = vsel %vm818_vm2, %v815_v39, 0  ;;  %4007 = vmatmul.mubr.msk.bf16.vlgmr.msra.gmra.mrb[24].mxu0 %vm818_vm2, %v812_v5 }
 0x23c   :  { %3999 = vmatpush3.bf16.xpose.msra.mxu1 %v870_v43  ;;  %4017 = vmatpush3.bf16.msra.mxu0 %v1100_v40 }
 0x23d   :  { %4010 = vmatprep.subr.bf16.mxu1 %v4483_v16  ;;  %4018 = vmatprep.mubr.msk.bf16.mxu0 %vm4484_vm1, %v4483_v16 }
 0x23e   :  { %v567_v44 = vpop.f32.mrb[16].mxu1  ;;  %v4768_v45 = vpop.f32.mrb[16].mxu0  ;;  %4028 = vmatprep.subr.bf16.mxu0 %v4483_v16 }
 0x23f   :  { %v3958_v46 = vpop.f32.mrb[17].mxu1  ;;  %v3982_v47 = vpop.f32.mrb[17].mxu0 }
 0x240   :  { %v570_v48 = vpop.f32.mrb[18].mxu1  ;;  %v4771_v49 = vpop.f32.mrb[18].mxu0 }
 0x241   :  { %v817_v50 = vpack.c.bf16 %v570_v48, %v567_v44  ;;  %v1102_v51 = vpack.c.bf16 %v4771_v49, %v4768_v45  ;;  %v3959_v52 = vpop.f32.mrb[19].mxu1  ;;  %v3983_v53 = vpop.f32.mrb[19].mxu0 }
 0x243   :  { %v964_v54 = vsel %vm818_vm2, %v817_v50, 0  ;;  %4001 = vmatmul.mubr.msk.bf16.vlgmr.msra.gmra.mrb[28].mxu1 %vm818_vm2, %v811_v18 }
 0x244   :  { %4011 = vmatpush3.bf16.xpose.msra.mxu1 %v964_v54  ;;  %4012 = vmatprep.mubr.msk.bf16.mxu1 %vm4484_vm1, %v4483_v16 }
 0x245   :  { %4022 = vmatprep.subr.bf16.mxu1 %v4483_v16 }
 0x246   :  { %v689_v55 = vpop.f32.mrb[20].mxu1 }
 0x247   :  { %v3974_v56 = vpop.f32.mrb[21].mxu1 }
 0x248   :  { %v692_v57 = vpop.f32.mrb[22].mxu1 }
 0x249   :  { %v1101_v58 = vpack.c.bf16 %v692_v57, %v689_v55  ;;  %v3975_v59 = vpop.f32.mrb[23].mxu1 }
 0x24b   :  { %4013 = vmatmul.mubr.msk.bf16.vlgmr.msra.gmra.mrb[32].mxu1 %vm818_vm2, %v813_v31 }
 0x24c   :  { %4023 = vmatpush3.bf16.msra.mxu1 %v1101_v58  ;;  %4024 = vmatprep.mubr.msk.bf16.mxu1 %vm4484_vm1, %v4483_v16 }
 0x24d   :  { %4034 = vmatprep.subr.bf16.mxu1 %v4483_v16 }
 0x24e   :  { %v4784_v60 = vpop.f32.mrb[24].mxu1 }
 0x24f   :  { %v3990_v61 = vpop.f32.mrb[25].mxu1 }
 0x250   :  { %v4786_v62 = vpop.f32.mrb[26].mxu1 }
 0x251   :  { %v1103_v63 = vpack.c.bf16 %v4786_v62, %v4784_v60  ;;  %v3991_v0 = vpop.f32.mrb[27].mxu1  ;;  %v1284_v60 = vld [vmem:[%s5345_s7] sm:$0xf] }
 0x252   :  { %v1293_v62 = vsel %vm1291_vm4, %v1284_v60, 0 }
 0x306   :  { %v859_v2 = vpop.f32.mrb[20].mxu0 }
 0x307   :  { %v860_v4 = vadd.f32 %v859_v2, %v66_v1  ;;  %v3996_v5 = vpop.f32.mrb[21].mxu0 }
 0x308   :  { %v862_v6 = vpop.f32.mrb[22].mxu0 }
 0x309   :  { %v863_v7 = vadd.f32 %v862_v6, %v67_v3  ;;  %v3997_v8 = vpop.f32.mrb[23].mxu0  ;;  %v1008_v9 = vsel %vm1007_vm3, %v860_v4, -inf }
 0x30a   :  { %1009 = vmax.xlane.f32.xlu0 %v1008_v9 }
 0x30b   :  { %v1011_v10 = vsel %vm1007_vm3, %v863_v7, -inf }
 0x30c   :  { %1012 = vmax.xlane.f32.xlu1 %v1011_v10 }
 0x30e   :  { %v953_v11 = vpop.f32.mrb[24].mxu0 }
 0x30f   :  { %v4008_v12 = vpop.f32.mrb[25].mxu0  ;;  %v954_v20 = vadd.f32 %v953_v11, %v66_v1 }
 0x310   :  { %v956_v13 = vpop.f32.mrb[26].mxu0 }
 0x311   :  { %v4009_v14 = vpop.f32.mrb[27].mxu0  ;;  %v957_v24 = vadd.f32 %v956_v13, %v67_v3  ;;  %v1020_v26 = vsel %vm1007_vm3, %v954_v20, -inf }
 0x313   :  { %v1023_v30 = vsel %vm1007_vm3, %v957_v24, -inf }
 0x316   :  { %v906_v15 = vpop.f32.mrb[28].mxu1 }
 0x317   :  { %v907_v17 = vadd.f32 %v906_v15, %v66_v1  ;;  %v4002_v18 = vpop.f32.mrb[29].mxu1 }
 0x318   :  { %v909_v19 = vpop.f32.mrb[30].mxu1 }
 0x319   :  { %v910_v21 = vadd.f32 %v909_v19, %v67_v3  ;;  %v4003_v22 = vpop.f32.mrb[31].mxu1  ;;  %v1014_v23 = vsel %vm1007_vm3, %v907_v17, -inf }
 0x31a   :  { %1015 = vmax.xlane.f32.xlu0 %v1014_v23 }
 0x31b   :  { %v1017_v25 = vsel %vm1007_vm3, %v910_v21, -inf }
 0x31c   :  { %1018 = vmax.xlane.f32.xlu1 %v1017_v25 }
 0x31e   :  { %1021 = vmax.xlane.f32.xlu0 %v1020_v26  ;;  %v1000_v27 = vpop.f32.mrb[32].mxu1 }
 0x31f   :  { %v1001_v28 = vadd.f32 %v1000_v27, %v66_v1  ;;  %v4014_v29 = vpop.f32.mrb[33].mxu1 }
 0x320   :  { %1024 = vmax.xlane.f32.xlu1 %v1023_v30  ;;  %v1003_v31 = vpop.f32.mrb[34].mxu1 }
 0x321   :  { %v1004_v32 = vadd.f32 %v1003_v31, %v67_v3  ;;  %v4015_v33 = vpop.f32.mrb[35].mxu1  ;;  %v1026_v34 = vsel %vm1007_vm3, %v1001_v28, -inf }
 0x322   :  { %1027 = vmax.xlane.f32.xlu0 %v1026_v34 }
 0x323   :  { %v1029_v35 = vsel %vm1007_vm3, %v1004_v32, -inf }
 0x324   :  { %1030 = vmax.xlane.f32.xlu1 %v1029_v35 }
 0x397   :  { %v1010_v36 = vpop.xlane.xlu0 %1009 }
 0x398   :  { %v1032_v37 = vsub.f32 %v860_v4, %v1010_v36 }
 0x399   :  { %v1013_v38 = vpop.xlane.xlu1 %1012 }
 0x39a   :  { %v1040_v39 = vmul.f32 1.442695, %v1032_v37  ;;  %v1033_v40 = vsub.f32 %v863_v7, %v1013_v38 }
 0x39c   :  { %4375 = vpow2.f32 %v1040_v39  ;;  %v1042_v41 = vmul.f32 1.442695, %v1033_v40 }
 0x39e   :  { %4377 = vpow2.f32 %v1042_v41 }
 0x3a6   :  { %v4376_v42 = vpop.eup %4375 }
 0x3a7   :  { %v1016_v43 = vpop.xlane.xlu0 %1015  ;;  %v1056_v44 = vsel %vm1007_vm3, %v4376_v42, 0.0 }
 0x3a8   :  { %v4378_v46 = vpop.eup %4377  ;;  %v1034_v47 = vsub.f32 %v907_v17, %v1016_v43  ;;  %1057 = vadd.xlane.f32.xlu0 %v1056_v44 }
 0x3a9   :  { %v1019_v48 = vpop.xlane.xlu1 %1018  ;;  %v1059_v50 = vsel %vm1007_vm3, %v4378_v46, 0.0 }
 0x3aa   :  { %v1044_v52 = vmul.f32 1.442695, %v1034_v47  ;;  %v1035_v53 = vsub.f32 %v910_v21, %v1019_v48  ;;  %1060 = vadd.xlane.f32.xlu1 %v1059_v50  ;;  %v1286_v47 = vld [vmem:[%s5345_s7 + $0x8] sm:$0xf] }
 0x3ab   :  { %v1022_v54 = vpop.xlane.xlu0 %1021 }
 0x3ac   :  { %4379 = vpow2.f32 %v1044_v52  ;;  %v1046_v55 = vmul.f32 1.442695, %v1035_v53  ;;  %v1036_v56 = vsub.f32 %v954_v20, %v1022_v54  ;;  %v1387_v54 = vsel %vm1291_vm4, %v1286_v47, 0 }
 0x3ad   :  { %v1025_v57 = vpop.xlane.xlu1 %1024 }
 0x3ae   :  { %4381 = vpow2.f32 %v1046_v55  ;;  %v1048_v58 = vmul.f32 1.442695, %v1036_v56  ;;  %v1037_v59 = vsub.f32 %v957_v24, %v1025_v57  ;;  %v1287_v56 = vld [vmem:[%s5345_s7 + $0xc] sm:$0xf] }
 0x3af   :  { %v1028_v61 = vpop.xlane.xlu0 %1027 }
 0x3b0   :  { %4383 = vpow2.f32 %v1048_v58  ;;  %v1050_v0 = vmul.f32 1.442695, %v1037_v59  ;;  %v1038_v1 = vsub.f32 %v1001_v28, %v1028_v61 }
 0x3b1   :  { %v1031_v2 = vpop.xlane.xlu1 %1030 }
 0x3b2   :  { %4385 = vpow2.f32 %v1050_v0  ;;  %v1052_v3 = vmul.f32 1.442695, %v1038_v1  ;;  %v1039_v4 = vsub.f32 %v1004_v32, %v1031_v2  ;;  %v1434_v0 = vsel %vm1291_vm4, %v1287_v56, 0 }
 0x3b4   :  { %4387 = vpow2.f32 %v1052_v3  ;;  %v1054_v5 = vmul.f32 1.442695, %v1039_v4 }
 0x3b6   :  { %v4380_v6 = vpop.eup %4379  ;;  %4389 = vpow2.f32 %v1054_v5 }
 0x3b7   :  { %v1062_v7 = vsel %vm1007_vm3, %v4380_v6, 0.0 }
 0x3b8   :  { %v4382_v8 = vpop.eup %4381  ;;  %1063 = vadd.xlane.f32.xlu0 %v1062_v7 }
 0x3b9   :  { %v1065_v9 = vsel %vm1007_vm3, %v4382_v8, 0.0 }
 0x3ba   :  { %v4384_v10 = vpop.eup %4383  ;;  %1066 = vadd.xlane.f32.xlu1 %v1065_v9 }
 0x3bb   :  { %v1068_v11 = vsel %vm1007_vm3, %v4384_v10, 0.0 }
 0x3bc   :  { %v4386_v12 = vpop.eup %4385  ;;  %1069 = vadd.xlane.f32.xlu0 %v1068_v11 }
 0x3bd   :  { %v1071_v13 = vsel %vm1007_vm3, %v4386_v12, 0.0 }
 0x3be   :  { %v4388_v14 = vpop.eup %4387  ;;  %1072 = vadd.xlane.f32.xlu1 %v1071_v13 }
 0x3bf   :  { %v1074_v15 = vsel %vm1007_vm3, %v4388_v14, 0.0 }
 0x3c0   :  { %v4390_v17 = vpop.eup %4389  ;;  %1075 = vadd.xlane.f32.xlu0 %v1074_v15 }
 0x3c1   :  { %v1077_v18 = vsel %vm1007_vm3, %v4390_v17, 0.0 }
 0x3c2   :  { %1078 = vadd.xlane.f32.xlu1 %v1077_v18 }
 0x435   :  { %v1058_v19 = vpop.xlane.xlu0 %1057 }
 0x436   :  { %4391 = vrcp.f32 %v1058_v19 }
 0x437   :  { %v1061_v20 = vpop.xlane.xlu1 %1060 }
 0x438   :  { %4393 = vrcp.f32 %v1061_v20 }
 0x440   :  { %v4392_v21 = vpop.eup %4391 }
 0x441   :  { %v1088_v23 = vmul.f32 %v4392_v21, %v4376_v42 }
 0x442   :  { %v4394_v22 = vpop.eup %4393 }
 0x443   :  { %v1089_v24 = vmul.f32 %v4394_v22, %v4378_v46 }
 0x445   :  { %v1064_v25 = vpop.xlane.xlu0 %1063  ;;  %v1096_v26 = vpack.c.bf16 %v1089_v24, %v1088_v23 }
 0x446   :  { %4395 = vrcp.f32 %v1064_v25 }
 0x447   :  { %4019 = vmatmul.mubr.msk.bf16.vlgmr.msra.gmra.mrb[28].mxu0 %vm1007_vm3, %v1096_v26  ;;  %v1067_v27 = vpop.xlane.xlu1 %1066 }
 0x448   :  { %4029 = vmatpush3.bf16.msra.mxu0 %v1102_v51  ;;  %4397 = vrcp.f32 %v1067_v27  ;;  %4030 = vmatprep.mubr.msk.bf16.mxu0 %vm4484_vm1, %v4483_v16 }
 0x449   :  { %v1070_v28 = vpop.xlane.xlu0 %1069  ;;  %4040 = vmatprep.subr.bf16.mxu0 %v4483_v16 }
 0x44a   :  { %4399 = vrcp.f32 %v1070_v28 }
 0x44b   :  { %v1073_v29 = vpop.xlane.xlu1 %1072 }
 0x44c   :  { %4401 = vrcp.f32 %v1073_v29 }
 0x44d   :  { %v1076_v30 = vpop.xlane.xlu0 %1075 }
 0x44e   :  { %4403 = vrcp.f32 %v1076_v30 }
 0x44f   :  { %v1079_v31 = vpop.xlane.xlu1 %1078 }
 0x450   :  { %v4396_v32 = vpop.eup %4395  ;;  %4405 = vrcp.f32 %v1079_v31 }
 0x451   :  { %v1090_v34 = vmul.f32 %v4396_v32, %v4380_v6 }
 0x452   :  { %v4398_v33 = vpop.eup %4397 }
 0x453   :  { %v1091_v35 = vmul.f32 %v4398_v33, %v4382_v8 }
 0x454   :  { %v4400_v45 = vpop.eup %4399 }
 0x455   :  { %v1097_v49 = vpack.c.bf16 %v1091_v35, %v1090_v34  ;;  %v1092_v36 = vmul.f32 %v4400_v45, %v4384_v10  ;;  %v3582_v45 = vld [vmem:[%s5346_s8] ss:$0 sm:$0xff] }
 0x456   :  { %v4402_v51 = vpop.eup %4401 }
 0x457   :  { %v1093_v37 = vmul.f32 %v4402_v51, %v4386_v12  ;;  %4025 = vmatmul.mubr.msk.bf16.vlgmr.msra.gmra.mrb[36].mxu1 %vm1007_vm3, %v1097_v49 }
 0x458   :  { %v4404_v38 = vpop.eup %4403  ;;  %4035 = vmatpush3.bf16.msra.mxu1 %v1103_v63  ;;  %4036 = vmatprep.mubr.msk.bf16.mxu1 %vm4484_vm1, %v4483_v16  ;;  %v1285_v63 = vld [vmem:[%s5345_s7 + $0x4] sm:$0xf] }
 0x459   :  { %v1098_v39 = vpack.c.bf16 %v1093_v37, %v1092_v36  ;;  %4046 = vmatprep.subr.bf16.mxu1 %v4483_v16  ;;  %v1094_v41 = vmul.f32 %v4404_v38, %v4388_v14  ;;  %v1340_v44 = vsel %vm1291_vm4, %v1285_v63, 0 }
 0x45a   :  { %v4406_v40 = vpop.eup %4405 }
 0x45b   :  { %v1095_v42 = vmul.f32 %v4406_v40, %v4390_v17  ;;  %4031 = vmatmul.mubr.msk.bf16.vlgmr.msra.gmra.mrb[32].mxu0 %vm1007_vm3, %v1098_v39 }
 0x45c   :  { %4042 = vmatprep.mubr.msk.bf16.mxu0 %vm4484_vm1, %v4483_v16  ;;  %4041 = vmatpush3.bf16.msra.mxu0 %v1293_v62  ;;  %v4456_v62 = vld [vmem:[%s5366_s20 + $0x8] sm:$0xff] }
 0x45d   :  { %v1099_v43 = vpack.c.bf16 %v1095_v42, %v1094_v41  ;;  %4052 = vmatprep.subr.bf16.mxu0 %v4483_v16  ;;  %v4455_v42 = vld [vmem:[%s5366_s20] sm:$0xff] }
 0x45f   :  { %4037 = vmatmul.mubr.msk.bf16.vlgmr.msra.gmra.mrb[40].mxu1 %vm1007_vm3, %v1099_v43 }
 0x460   :  { %4048 = vmatprep.mubr.msk.bf16.mxu1 %vm4484_vm1, %v4483_v16  ;;  %4047 = vmatpush3.bf16.msra.mxu1 %v1340_v44 }
 0x461   :  { %4058 = vmatprep.subr.bf16.mxu1 %v4483_v16 }
 0x51a   :  { %v1141_v46 = vpop.f32.mrb[28].mxu0 }
 0x51b   :  { %v4020_v48 = vpop.f32.mrb[29].mxu0 }
 0x51c   :  { %v1144_v50 = vpop.f32.mrb[30].mxu0 }
 0x51d   :  { %v1280_v52 = vpack.c.bf16 %v1144_v50, %v1141_v46  ;;  %v4021_v53 = vpop.f32.mrb[31].mxu0 }
 0x51f   :  { %4043 = vmatmul.mubr.msk.bf16.vlgmr.msra.gmra.mrb[36].mxu0 %vm818_vm2, %v1280_v52 }
 0x520   :  { %4053 = vmatpush3.bf16.msra.mxu0 %v1387_v54  ;;  %4054 = vmatprep.mubr.msk.bf16.mxu0 %vm4484_vm1, %v4483_v16 }
 0x521   :  { %4064 = vmatprep.subr.bf16.mxu0 %v4483_v16 }
 0x52a   :  { %v1185_v55 = vpop.f32.mrb[36].mxu1 }
 0x52b   :  { %v4026_v57 = vpop.f32.mrb[37].mxu1 }
 0x52c   :  { %v1188_v58 = vpop.f32.mrb[38].mxu1 }
 0x52d   :  { %v1281_v59 = vpack.c.bf16 %v1188_v58, %v1185_v55  ;;  %v4027_v61 = vpop.f32.mrb[39].mxu1  ;;  %v4325_v58 = vld [vmem:[%s5349_s11] sm:$0xff]  }
 0x52e   :  { %v1229_v1 = vpop.f32.mrb[32].mxu0  ;;  %v4327_v61 = vld [vmem:[%s5351_s13] sm:$0xff]  }
 0x52f   :  { %v4032_v2 = vpop.f32.mrb[33].mxu0  ;;  %4049 = vmatmul.mubr.msk.bf16.vlgmr.msra.gmra.mrb[44].mxu1 %vm818_vm2, %v1281_v59  ;;  %v4326_v59 = vld [vmem:[%s5349_s11 + $0x8] sm:$0xff]  }
 0x530   :  { %v1232_v3 = vpop.f32.mrb[34].mxu0  ;;  %4059 = vmatpush3.bf16.msra.mxu1 %v1434_v0  ;;  %4060 = vmatprep.mubr.msk.bf16.mxu1 %vm4484_vm1, %v4483_v16  ;;  %v4328_v0 = vld [vmem:[%s5351_s13 + $0x8] sm:$0xff]   ;;  %v4330_v2 = vld [vmem:[%s5351_s13 + $0x18] sm:$0xff]  }
 0x531   :  { %v1282_v4 = vpack.c.bf16 %v1232_v3, %v1229_v1  ;;  %v4033_v5 = vpop.f32.mrb[35].mxu0  ;;  %4072 = vmatprep.subr.bf16.mxu1 %v4483_v16  ;;  %v4329_v1 = vld [vmem:[%s5351_s13 + $0x10] sm:$0xff]   ;;  %v4331_v3 = vld [vmem:[%s5351_s13 + $0x20] sm:$0xff]  }
 0x532   :  { %v1273_v6 = vpop.f32.mrb[40].mxu1 }
 0x533   :  { %v4038_v7 = vpop.f32.mrb[41].mxu1  ;;  %4055 = vmatmul.mubr.msk.bf16.vlgmr.msra.gmra.mrb[40].mxu0 %vm818_vm2, %v1282_v4  ;;  %v4332_v4 = vld [vmem:[%s5351_s13 + $0x28] sm:$0xff]  }
 0x534   :  { %v1276_v8 = vpop.f32.mrb[42].mxu1  ;;  %4068 = vmatprep.mubr.msk.bf16.mxu0 %vm4484_vm1, %v4483_v16  ;;  %4065 = vmatpush3.bf16.msra.mxu0 %v4325_v58 }
 0x535   :  { %v1283_v9 = vpack.c.bf16 %v1276_v8, %v1273_v6  ;;  %v4039_v10 = vpop.f32.mrb[43].mxu1  ;;  %4066 = vmatprep.subr.bf16.mxu0 %v4483_v16 }
 0x537   :  { %4061 = vmatmul.mubr.msk.bf16.vlgmr.msra.gmra.mrb[48].mxu1 %vm818_vm2, %v1283_v9 }
 0x538   :  { %4088 = vmatprep.mubr.msk.bf16.mxu1 %vm4484_vm1, %v4483_v16  ;;  %4067 = vmatpush3.bf16.msra.mxu0 %v4326_v59 }
 0x539   :  { %4092 = vmatprep.subr.bf16.mxu0 %v4483_v16  ;;  %4073 = vmatpush3.bf16.msra.mxu1 %v4327_v61 }
 0x53a   :  { %4074 = vmatprep.subr.bf16.mxu1 %v4483_v16 }
 0x53d   :  { %4075 = vmatpush3.bf16.msra.mxu1 %v4328_v0 }
 0x53e   :  { %4076 = vmatprep.subr.bf16.mxu1 %v4483_v16 }
 0x541   :  { %4077 = vmatpush3.bf16.msra.mxu1 %v4329_v1 }
 0x542   :  { %4078 = vmatprep.subr.bf16.mxu1 %v4483_v16 }
 0x545   :  { %4079 = vmatpush3.bf16.msra.mxu1 %v4330_v2 }
 0x546   :  { %4080 = vmatprep.subr.bf16.mxu1 %v4483_v16 }
 0x549   :  { %4081 = vmatpush3.bf16.msra.mxu1 %v4331_v3  ;;  %v3600_v3 = vld [vmem:[%s5367_s0 + $0x1] ss:$0 sm:$0xff] }
 0x54a   :  { %4082 = vmatprep.subr.bf16.mxu1 %v4483_v16 }
 0x54d   :  { %4083 = vmatpush3.bf16.msra.mxu1 %v4332_v4 }
 0x54e   :  { %4084 = vmatprep.subr.bf16.mxu1 %v4483_v16 }
 0x5f2   :  { %v1329_v11 = vpop.f32.mrb[36].mxu0 }
 0x5f3   :  { %v4044_v12 = vpop.f32.mrb[37].mxu0  ;;  %v1477_v17 = vsel %vm70_vm0, %v1329_v11, 0.0 }
 0x5f4   :  { %v1332_v13 = vpop.f32.mrb[38].mxu0  ;;  %v3583_v12 = vld [vmem:[%s5347_s9] ss:$0 sm:$0xff] }
 0x5f5   :  { %v4045_v14 = vpop.f32.mrb[39].mxu0  ;;  %v1484_v22 = vsel %vm70_vm0, %v1332_v13, 0.0 }
 0x602   :  { %v1376_v15 = vpop.f32.mrb[44].mxu1 }
 0x603   :  { %v1478_v18 = vsel %vm70_vm0, %v1376_v15, 0.0  ;;  %v4050_v19 = vpop.f32.mrb[45].mxu1 }
 0x604   :  { %v1479_v20 = vadd.f32 %v1478_v18, %v1477_v17  ;;  %v1379_v21 = vpop.f32.mrb[46].mxu1  ;;  %v3584_v18 = vld [vmem:[%s5348_s10] ss:$0 sm:$0xff] }
 0x605   :  { %v1485_v23 = vsel %vm70_vm0, %v1379_v21, 0.0  ;;  %v4051_v24 = vpop.f32.mrb[47].mxu1 }
 0x606   :  { %v1486_v25 = vadd.f32 %v1485_v23, %v1484_v22  ;;  %v1423_v26 = vpop.f32.mrb[40].mxu0  ;;  %v4333_v23 = vld [vmem:[%s5351_s13 + $0x30] sm:$0xff]   ;;  %v4334_v24 = vld [vmem:[%s5351_s13 + $0x38] sm:$0xff]  }
 0x607   :  { %v1480_v27 = vsel %vm70_vm0, %v1423_v26, 0.0  ;;  %v4056_v28 = vpop.f32.mrb[41].mxu0  ;;  %4085 = vmatpush3.bf16.msra.mxu1 %v4333_v23  ;;  %v4348_v23 = vld [vmem:[%s5344_s6 + $0x60] sm:$0xff]  }
 0x608   :  { %v1481_v29 = vadd.f32 %v1480_v27, %v1479_v20  ;;  %v1426_v30 = vpop.f32.mrb[42].mxu0  ;;  %4086 = vmatprep.subr.bf16.mxu1 %v4483_v16 }
 0x609   :  { %v1487_v31 = vsel %vm70_vm0, %v1426_v30, 0.0  ;;  %v4057_v32 = vpop.f32.mrb[43].mxu0 }
 0x60a   :  { %v1488_v33 = vadd.f32 %v1487_v31, %v1486_v25  ;;  %v1470_v34 = vpop.f32.mrb[48].mxu1  ;;  %v3585_v25 = vld [vmem:[%s5350_s12] ss:$0 sm:$0xff] }
 0x60b   :  { %v1482_v35 = vsel %vm70_vm0, %v1470_v34, 0.0  ;;  %v4062_v49 = vpop.f32.mrb[49].mxu1  ;;  %4087 = vmatpush3.bf16.msra.mxu1 %v4334_v24  ;;  %v4349_v24 = vld [vmem:[%s5342_s4 + $0x78] sm:$0xff]  }
 0x60c   :  { %v1483_v51 = vadd.f32 %v1482_v35, %v1481_v29  ;;  %v1473_v36 = vpop.f32.mrb[50].mxu1  ;;  %4124 = vmatprep.subr.bf16.mxu1 %v4483_v16  ;;  %v3589_v35 = vld [vmem:[%s5352_s14] ss:$0 sm:$0xff] }
 0x60d   :  { %v1489_v37 = vsel %vm70_vm0, %v1473_v36, 0.0  ;;  %v4063_v38 = vpop.f32.mrb[51].mxu1 }
 0x60e   :  { %v1498_v39 = vadd.f32 %v3582_v45, %v1483_v51  ;;  %v1490_v40 = vadd.f32 %v1489_v37, %v1488_v33 }
 0x610   :  { %v1499_v41 = vadd.f32 %v3582_v45, %v1490_v40  ;;  %v4878_v43 = vadd.f32 %v4455_v42, %v1498_v39 }
 0x612   :  { %v1504_v60 = vsel %vm70_vm0, %v4878_v43, 0.0  ;;  %v4885_v63 = vadd.f32 %v4456_v62, %v1499_v41 }
 0x613   :  { %1505 = vadd.xlane.f32.xlu0 %v1504_v60 }
 0x614   :  { %v1507_v44 = vsel %vm70_vm0, %v4885_v63, 0.0 }
 0x615   :  { %1508 = vadd.xlane.f32.xlu1 %v1507_v44 }
 0x6a0   :  { %v1506_v46 = vpop.xlane.xlu0 %1505 }
 0x6a1   :  { %v1510_v47 = vmul.f32 0.03125, %v1506_v46 }
 0x6a2   :  { %v1509_v48 = vpop.xlane.xlu1 %1508 }
 0x6a3   :  { %v1512_v50 = vsub.f32 %v4878_v43, %v1510_v47  ;;  %v1511_v52 = vmul.f32 0.03125, %v1509_v48 }
 0x6a5   :  { %v1513_v53 = vsub.f32 %v4885_v63, %v1511_v52  ;;  %v1514_v54 = vmul.f32 %v1512_v50, %v1512_v50 }
 0x6a7   :  { %v1516_v55 = vsel %vm70_vm0, %v1514_v54, 0.0  ;;  %v1515_v56 = vmul.f32 %v1513_v53, %v1513_v53  ;;  %v4336_v54 = vld [vmem:[%s5343_s5 + $0x40] sm:$0xff]  }
 0x6a8   :  { %1517 = vadd.xlane.f32.xlu0 %v1516_v55  ;;  %v4337_v55 = vld [vmem:[%s5342_s4 + $0x48] sm:$0xff]  }
 0x6a9   :  { %v1519_v57 = vsel %vm70_vm0, %v1515_v56, 0.0  ;;  %v4338_v56 = vld [vmem:[%s5343_s5 + $0x48] sm:$0xff]  }
 0x6aa   :  { %1520 = vadd.xlane.f32.xlu1 %v1519_v57 }
 0x735   :  { %v1518_v5 = vpop.xlane.xlu0 %1517 }
 0x736   :  { %v1522_v6 = vmul.f32 0.03125, %v1518_v5 }
 0x737   :  { %v1521_v7 = vpop.xlane.xlu1 %1520 }
 0x738   :  { %v1524_v8 = vadd.f32 1e-05, %v1522_v6  ;;  %v1523_v9 = vmul.f32 0.03125, %v1521_v7 }
 0x73a   :  { %4407 = vrsqrt.f32 %v1524_v8  ;;  %v1525_v10 = vadd.f32 1e-05, %v1523_v9  ;;  %v3601_v8 = vld [vmem:[%s5368_s1 + $0x1] ss:$0 sm:$0xff] }
 0x73c   :  { %4409 = vrsqrt.f32 %v1525_v10 }
 0x744   :  { %v4408_v11 = vpop.eup %4407 }
 0x745   :  { %v1528_v13 = vmul.f32 %v4408_v11, %v1512_v50 }
 0x746   :  { %v4410_v14 = vpop.eup %4409 }
 0x747   :  { %v1536_v15 = vmul.f32 %v3583_v12, %v1528_v13  ;;  %v1529_v17 = vmul.f32 %v4410_v14, %v1513_v53  ;;  %v4335_v53 = vld [vmem:[%s5342_s4 + $0x40] sm:$0xff]  }
 0x748   :  { %v4340_v13 = vld [vmem:[%s5343_s5 + $0x60] sm:$0xff]  }
 0x749   :  { %v1537_v19 = vmul.f32 %v3583_v12, %v1529_v17  ;;  %v1544_v20 = vadd.f32 %v3584_v18, %v1536_v15  ;;  %v4339_v12 = vld [vmem:[%s5342_s4 + $0x50] sm:$0xff]   ;;  %v4341_v15 = vld [vmem:[%s5342_s4 + $0x58] sm:$0xff]   ;;  %v4342_v17 = vld [vmem:[%s5343_s5 + $0x68] sm:$0xff]  }
 0x74b   :  { %v1545_v21 = vadd.f32 %v3584_v18, %v1537_v19  ;;  %v4343_v18 = vld [vmem:[%s5342_s4 + $0x60] sm:$0xff]  }
 0x74c   :  { %v4344_v19 = vld [vmem:[%s5344_s6 + $0x40] sm:$0xff]  }
 0x74d   :  { %v1546_v22 = vpack.c.bf16 %v1545_v21, %v1544_v20  ;;  %v4345_v20 = vld [vmem:[%s5342_s4 + $0x68] sm:$0xff]  }
 0x74e   :  { %v4346_v21 = vld [vmem:[%s5344_s6 + $0x48] sm:$0xff]  }
 0x74f   :  { %4069 = vmatmul.mubr.msk.bf16.vlgmr.msra.gmra.mrb[44].mxu0 %vm70_vm0, %v1546_v22  ;;  %v4347_v22 = vld [vmem:[%s5342_s4 + $0x70] sm:$0xff]  }
 0x750   :  { %4096 = vmatprep.mubr.msk.bf16.mxu0 %vm4484_vm1, %v4483_v16  ;;  %4093 = vmatpush3.bf16.msra.mxu0 %v4335_v53 }
 0x751   :  { %4094 = vmatprep.subr.bf16.mxu0 %v4483_v16 }
 0x754   :  { %4095 = vmatpush3.bf16.msra.mxu0 %v4337_v55 }
 0x755   :  { %4100 = vmatprep.subr.bf16.mxu0 %v4483_v16 }
 0x822   :  { %v1607_v26 = vpop.f32.mrb[44].mxu0 }
 0x823   :  { %v1608_v27 = vadd.f32 %v3585_v25, %v1607_v26  ;;  %v4070_v28 = vpop.f32.mrb[45].mxu0  ;;  %v4351_v26 = vld [vmem:[%s5343_s5 + $0x50] sm:$0xff]  }
 0x824   :  { %v1610_v29 = vpop.f32.mrb[46].mxu0  ;;  %v4353_v28 = vld [vmem:[%s5343_s5 + $0x70] sm:$0xff]  }
 0x825   :  { %v1611_v30 = vadd.f32 %v3585_v25, %v1610_v29  ;;  %v4071_v31 = vpop.f32.mrb[47].mxu0  ;;  %v1614_v32 = vmax.f32 %v1608_v27, 0.0  ;;  %v4350_v25 = vld [vmem:[%s5344_s6 + $0x68] sm:$0xff]   ;;  %v4352_v27 = vld [vmem:[%s5343_s5 + $0x58] sm:$0xff]  }
 0x826   :  { %v4354_v29 = vld [vmem:[%s5343_s5 + $0x78] sm:$0xff]  }
 0x827   :  { %v1615_v33 = vmax.f32 %v1611_v30, 0.0  ;;  %v4355_v30 = vld [vmem:[%s5344_s6 + $0x50] sm:$0xff]   ;;  %v4356_v31 = vld [vmem:[%s5344_s6 + $0x58] sm:$0xff]  }
 0x829   :  { %v1616_v34 = vpack.c.bf16 %v1615_v33, %v1614_v32  ;;  %v4357_v32 = vld [vmem:[%s5344_s6 + $0x70] sm:$0xff]   ;;  %v4358_v33 = vld [vmem:[%s5344_s6 + $0x78] sm:$0xff]  }
 0x82b   :  { %4089 = vmatmul.mubr.bf16.vlgmr.msra.gmra.mrb[52].mxu1 %v1616_v34 }
 0x82c   :  { %4128 = vmatprep.mubr.msk.bf16.mxu1 %vm4484_vm1, %v4483_v16  ;;  %4125 = vmatpush3.bf16.msra.mxu1 %v4336_v54 }
 0x82d   :  { %4126 = vmatprep.subr.bf16.mxu1 %v4483_v16 }
 0x830   :  { %4127 = vmatpush3.bf16.msra.mxu1 %v4338_v56 }
 0x831   :  { %4140 = vmatprep.subr.bf16.mxu1 %v4483_v16 }
 0x8fe   :  { %v1722_v45 = vpop.f32.mrb[52].mxu1 }
 0x8ff   :  { %v1723_v49 = vadd.f32 %v3589_v35, %v1722_v45  ;;  %v4090_v51 = vpop.f32.mrb[53].mxu1 }
 0x900   :  { %v1725_v36 = vpop.f32.mrb[54].mxu1 }
 0x901   :  { %v4951_v37 = vadd.f32 %v1723_v49, %v4878_v43  ;;  %v1726_v38 = vadd.f32 %v3589_v35, %v1725_v36  ;;  %v4091_v39 = vpop.f32.mrb[55].mxu1 }
 0x903   :  { %v4954_v40 = vadd.f32 %v1726_v38, %v4885_v63  ;;  %v1735_v41 = vsel %vm70_vm0, %v4951_v37, 0.0 }
 0x904   :  { %1736 = vadd.xlane.f32.xlu0 %v1735_v41 }
 0x905   :  { %v1738_v42 = vsel %vm70_vm0, %v4954_v40, 0.0 }
 0x906   :  { %1739 = vadd.xlane.f32.xlu1 %v1738_v42 }
 0x991   :  { %v1737_v60 = vpop.xlane.xlu0 %1736 }
 0x992   :  { %v1741_v62 = vmul.f32 0.03125, %v1737_v60 }
 0x993   :  { %v1740_v44 = vpop.xlane.xlu1 %1739 }
 0x994   :  { %v1743_v46 = vsub.f32 %v4951_v37, %v1741_v62  ;;  %v1742_v43 = vmul.f32 0.03125, %v1740_v44 }
 0x996   :  { %v1744_v47 = vsub.f32 %v4954_v40, %v1742_v43  ;;  %v1745_v48 = vmul.f32 %v1743_v46, %v1743_v46 }
 0x998   :  { %v1747_v63 = vsel %vm70_vm0, %v1745_v48, 0.0  ;;  %v1746_v50 = vmul.f32 %v1744_v47, %v1744_v47 }
 0x999   :  { %1748 = vadd.xlane.f32.xlu0 %v1747_v63 }
 0x99a   :  { %v1750_v52 = vsel %vm70_vm0, %v1746_v50, 0.0 }
 0x99b   :  { %1751 = vadd.xlane.f32.xlu1 %v1750_v52 }
 0xa26   :  { %v1749_v57 = vpop.xlane.xlu0 %1748 }
 0xa27   :  { %v1753_v58 = vmul.f32 0.03125, %v1749_v57 }
 0xa28   :  { %v1752_v59 = vpop.xlane.xlu1 %1751 }
 0xa29   :  { %v1755_v61 = vadd.f32 1e-05, %v1753_v58  ;;  %v1754_v0 = vmul.f32 0.03125, %v1752_v59 }
 0xa2b   :  { %4411 = vrsqrt.f32 %v1755_v61  ;;  %v1756_v1 = vadd.f32 1e-05, %v1754_v0 }
 0xa2d   :  { %4413 = vrsqrt.f32 %v1756_v1 }
 0xa35   :  { %v4412_v2 = vpop.eup %4411 }
 0xa36   :  { %v1759_v4 = vmul.f32 %v4412_v2, %v1743_v46 }
 0xa37   :  { %v4414_v5 = vpop.eup %4413 }
 0xa38   :  { %v1767_v6 = vmul.f32 %v3600_v3, %v1759_v4  ;;  %v1760_v7 = vmul.f32 %v4414_v5, %v1744_v47 }
 0xa3a   :  { %v1768_v9 = vmul.f32 %v3600_v3, %v1760_v7  ;;  %v1775_v10 = vadd.f32 %v3601_v8, %v1767_v6 }
 0xa3c   :  { %v1776_v11 = vadd.f32 %v3601_v8, %v1768_v9 }
 0xa3e   :  { %v4992_v14 = vpack.c.bf16 %v1776_v11, %v1775_v10 }
 0xa40   :  { %4097 = vmatmul.mubr.msk.bf16.vlgmr.msra.gmra.mrb[48].mxu0 %vm70_vm0, %v4992_v14  ;;  %4129 = vmatmul.mubr.msk.bf16.vlgmr.msra.gmra.mrb[56].mxu1 %vm70_vm0, %v4992_v14 }
 0xa41   :  { %4101 = vmatpush3.bf16.msra.mxu0 %v4339_v12  ;;  %4141 = vmatpush3.bf16.msra.mxu1 %v4340_v13 }
 0xa42   :  { %4102 = vmatprep.subr.bf16.mxu0 %v4483_v16  ;;  %4142 = vmatprep.subr.bf16.mxu1 %v4483_v16 }
 0xa43   :  { %4104 = vmatprep.mubr.msk.bf16.mxu0 %vm4484_vm1, %v4483_v16  ;;  %4144 = vmatprep.mubr.msk.bf16.mxu1 %vm4484_vm1, %v4483_v16 }
 0xa45   :  { %4103 = vmatpush3.bf16.msra.mxu0 %v4341_v15  ;;  %4143 = vmatpush3.bf16.msra.mxu1 %v4342_v17 }
 0xa46   :  { %4108 = vmatprep.subr.bf16.mxu0 %v4483_v16  ;;  %4156 = vmatprep.subr.bf16.mxu1 %v4483_v16 }
 0xa48   :  { %4105 = vmatmul.mubr.msk.bf16.vlgmr.msra.gmra.mrb[52].mxu0 %vm70_vm0, %v4992_v14  ;;  %4145 = vmatmul.mubr.msk.bf16.vlgmr.msra.gmra.mrb[60].mxu1 %vm70_vm0, %v4992_v14 }
 0xa49   :  { %4109 = vmatpush3.bf16.msra.mxu0 %v4343_v18  ;;  %4157 = vmatpush3.bf16.msra.mxu1 %v4344_v19 }
 0xa4a   :  { %4110 = vmatprep.subr.bf16.mxu0 %v4483_v16  ;;  %4158 = vmatprep.subr.bf16.mxu1 %v4483_v16 }
 0xa4b   :  { %4112 = vmatprep.mubr.msk.bf16.mxu0 %vm4484_vm1, %v4483_v16  ;;  %4160 = vmatprep.mubr.msk.bf16.mxu1 %vm4484_vm1, %v4483_v16 }
 0xa4d   :  { %4111 = vmatpush3.bf16.msra.mxu0 %v4345_v20  ;;  %4159 = vmatpush3.bf16.msra.mxu1 %v4346_v21 }
 0xa4e   :  { %4116 = vmatprep.subr.bf16.mxu0 %v4483_v16  ;;  %4172 = vmatprep.subr.bf16.mxu1 %v4483_v16 }
 0xa50   :  { %4113 = vmatmul.mubr.msk.bf16.vlgmr.msra.gmra.mrb[56].mxu0 %vm70_vm0, %v4992_v14  ;;  %4161 = vmatmul.mubr.msk.bf16.vlgmr.msra.gmra.mrb[64].mxu1 %vm70_vm0, %v4992_v14 }
 0xa51   :  { %4117 = vmatpush3.bf16.msra.mxu0 %v4347_v22  ;;  %4173 = vmatpush3.bf16.msra.mxu1 %v4348_v23 }
 0xa52   :  { %4118 = vmatprep.subr.bf16.mxu0 %v4483_v16  ;;  %4174 = vmatprep.subr.bf16.mxu1 %v4483_v16 }
 0xa53   :  { %4120 = vmatprep.mubr.msk.bf16.mxu0 %vm4484_vm1, %v4483_v16  ;;  %4176 = vmatprep.mubr.msk.bf16.mxu1 %vm4484_vm1, %v4483_v16 }
 0xa55   :  { %4119 = vmatpush3.bf16.msra.mxu0 %v4349_v24  ;;  %4175 = vmatpush3.bf16.msra.mxu1 %v4350_v25 }
 0xa56   :  { %4132 = vmatprep.subr.bf16.mxu0 %v4483_v16  ;;  %4188 = vmatprep.subr.bf16.mxu1 %v4483_v16 }
 0xa58   :  { %4121 = vmatmul.mubr.msk.bf16.vlgmr.msra.gmra.mrb[60].mxu0 %vm70_vm0, %v4992_v14  ;;  %4177 = vmatmul.mubr.msk.bf16.vlgmr.msra.gmra.mrb[68].mxu1 %vm70_vm0, %v4992_v14 }
 0xa59   :  { %4133 = vmatpush3.bf16.msra.mxu0 %v4351_v26  ;;  %4136 = vmatprep.mubr.msk.bf16.mxu0 %vm4484_vm1, %v4483_v16 }
 0xa5a   :  { %4134 = vmatprep.subr.bf16.mxu0 %v4483_v16  ;;  %4190 = vmatprep.mubr.msk.bf16.mxu1 %vm4484_vm1, %v4483_v16 }
 0xa5d   :  { %4135 = vmatpush3.bf16.msra.mxu0 %v4352_v27 }
 0xa5e   :  { %4148 = vmatprep.subr.bf16.mxu0 %v4483_v16 }
 0xa60   :  { %4137 = vmatmul.mubr.msk.bf16.vlgmr.msra.gmra.mrb[64].mxu0 %vm70_vm0, %v4992_v14 }
 0xa61   :  { %4149 = vmatpush3.bf16.msra.mxu0 %v4353_v28  ;;  %4152 = vmatprep.mubr.msk.bf16.mxu0 %vm4484_vm1, %v4483_v16 }
 0xa62   :  { %4150 = vmatprep.subr.bf16.mxu0 %v4483_v16 }
 0xa65   :  { %4151 = vmatpush3.bf16.msra.mxu0 %v4354_v29 }
 0xa66   :  { %4164 = vmatprep.subr.bf16.mxu0 %v4483_v16 }
 0xa68   :  { %4153 = vmatmul.mubr.msk.bf16.vlgmr.msra.gmra.mrb[68].mxu0 %vm70_vm0, %v4992_v14 }
 0xa69   :  { %4165 = vmatpush3.bf16.msra.mxu0 %v4355_v30  ;;  %4168 = vmatprep.mubr.msk.bf16.mxu0 %vm4484_vm1, %v4483_v16 }
 0xa6a   :  { %4166 = vmatprep.subr.bf16.mxu0 %v4483_v16 }
 0xa6d   :  { %4167 = vmatpush3.bf16.msra.mxu0 %v4356_v31 }
 0xa6e   :  { %4180 = vmatprep.subr.bf16.mxu0 %v4483_v16 }
 0xa70   :  { %4169 = vmatmul.mubr.msk.bf16.vlgmr.msra.gmra.mrb[72].mxu0 %vm70_vm0, %v4992_v14 }
 0xa71   :  { %4181 = vmatpush3.bf16.msra.mxu0 %v4357_v32  ;;  %4184 = vmatprep.mubr.msk.bf16.mxu0 %vm4484_vm1, %v4483_v16 }
 0xa72   :  { %4182 = vmatprep.subr.bf16.mxu0 %v4483_v16 }
 0xa75   :  { %4183 = vmatpush3.bf16.msra.mxu0 %v4358_v33 }
 0xa76   :  { %4194 = vmatprep.subr.bf16.mxu0 %v4483_v16 }
 0xa78   :  { %4185 = vmatmul.mubr.msk.bf16.vlgmr.msra.gmra.mrb[76].mxu0 %vm70_vm0, %v4992_v14 }
 0xa79   :  { %4196 = vmatprep.mubr.msk.bf16.mxu0 %vm4484_vm1, %v4483_v16 }
 0xb13   :  { %v1844_v34 = vpop.f32.mrb[48].mxu0  ;;  %v2073_v35 = vpop.f32.mrb[56].mxu1 }
 0xb14   :  { %v4098_v45 = vpop.f32.mrb[49].mxu0  ;;  %v4130_v49 = vpop.f32.mrb[57].mxu1  ;;  %v2468_v38 = vmul.f32 0.35355338, %v1844_v34 }
 0xb15   :  { %v1847_v51 = vpop.f32.mrb[50].mxu0  ;;  %v2076_v36 = vpop.f32.mrb[58].mxu1 }
 0xb16   :  { %v2469_v39 = vmul.f32 0.35355338, %v1847_v51  ;;  %v2480_v41 = vpack.c.bf16 %v2076_v36, %v2073_v35  ;;  %v4099_v42 = vpop.f32.mrb[51].mxu0  ;;  %v4131_v60 = vpop.f32.mrb[59].mxu1 }
 0xb18   :  { %v2476_v62 = vpack.c.bf16 %v2469_v39, %v2468_v38  ;;  %v2488_v44 = vsel %vm818_vm2, %v2480_v41, 0 }
 0xb19   :  { %4189 = vmatpush3.bf16.xpose.msra.mxu1 %v2488_v44  ;;  %v4457_v44 = vld [vmem:[%s5369_s26] sm:$0xff] }
 0xb1a   :  { %4200 = vmatprep.subr.bf16.mxu1 %v4483_v16 }
 0xb1b   :  { %v1897_v46 = vpop.f32.mrb[52].mxu0  ;;  %v2179_v43 = vpop.f32.mrb[60].mxu1 }
 0xb1c   :  { %v4106_v47 = vpop.f32.mrb[53].mxu0  ;;  %v4146_v48 = vpop.f32.mrb[61].mxu1  ;;  %v2470_v52 = vmul.f32 0.35355338, %v1897_v46 }
 0xb1d   :  { %v1900_v63 = vpop.f32.mrb[54].mxu0  ;;  %v2182_v50 = vpop.f32.mrb[62].mxu1  ;;  %v4458_v48 = vld [vmem:[%s5369_s26 + $0x8] sm:$0xff] }
 0xb1e   :  { %v2471_v53 = vmul.f32 0.35355338, %v1900_v63  ;;  %v2482_v54 = vpack.c.bf16 %v2182_v50, %v2179_v43  ;;  %v4107_v55 = vpop.f32.mrb[55].mxu0  ;;  %v4147_v56 = vpop.f32.mrb[63].mxu1 }
 0xb20   :  { %v2477_v57 = vpack.c.bf16 %v2471_v53, %v2470_v52  ;;  %v2582_v58 = vsel %vm818_vm2, %v2482_v54, 0  ;;  %4191 = vmatmul.mubr.msk.bf16.vlgmr.msra.gmra.mrb[72].mxu1 %vm818_vm2, %v2476_v62 }
 0xb21   :  { %4201 = vmatpush3.bf16.xpose.msra.mxu1 %v2582_v58  ;;  %4202 = vmatprep.mubr.msk.bf16.mxu1 %vm4484_vm1, %v4483_v16 }
 0xb22   :  { %4212 = vmatprep.subr.bf16.mxu1 %v4483_v16 }
 0xb23   :  { %v1950_v59 = vpop.f32.mrb[56].mxu0  ;;  %v2302_v61 = vpop.f32.mrb[64].mxu1 }
 0xb24   :  { %v4114_v0 = vpop.f32.mrb[57].mxu0  ;;  %v4162_v1 = vpop.f32.mrb[65].mxu1  ;;  %v2472_v4 = vmul.f32 0.35355338, %v1950_v59 }
 0xb25   :  { %v1953_v2 = vpop.f32.mrb[58].mxu0  ;;  %v2305_v3 = vpop.f32.mrb[66].mxu1 }
 0xb26   :  { %v2473_v5 = vmul.f32 0.35355338, %v1953_v2  ;;  %v2764_v6 = vpack.c.bf16 %v2305_v3, %v2302_v61  ;;  %v4115_v7 = vpop.f32.mrb[59].mxu0  ;;  %v4163_v8 = vpop.f32.mrb[67].mxu1 }
 0xb28   :  { %v2478_v9 = vpack.c.bf16 %v2473_v5, %v2472_v4 }
 0xb2a   :  { %4203 = vmatmul.mubr.msk.bf16.vlgmr.msra.gmra.mrb[76].mxu1 %vm818_vm2, %v2478_v9 }
 0xb2b   :  { %4213 = vmatpush3.bf16.msra.mxu1 %v2764_v6  ;;  %v2003_v10 = vpop.f32.mrb[60].mxu0  ;;  %v5124_v11 = vpop.f32.mrb[68].mxu1  ;;  %4214 = vmatprep.mubr.msk.bf16.mxu1 %vm4484_vm1, %v4483_v16 }
 0xb2c   :  { %v4122_v12 = vpop.f32.mrb[61].mxu0  ;;  %v4178_v13 = vpop.f32.mrb[69].mxu1  ;;  %4224 = vmatprep.subr.bf16.mxu1 %v4483_v16  ;;  %v2474_v17 = vmul.f32 0.35355338, %v2003_v10 }
 0xb2d   :  { %v2006_v14 = vpop.f32.mrb[62].mxu0  ;;  %v5129_v15 = vpop.f32.mrb[70].mxu1 }
 0xb2e   :  { %v2475_v18 = vmul.f32 0.35355338, %v2006_v14  ;;  %v2766_v19 = vpack.c.bf16 %v5129_v15, %v5124_v11  ;;  %v4123_v20 = vpop.f32.mrb[63].mxu0  ;;  %v4179_v21 = vpop.f32.mrb[71].mxu1 }
 0xb30   :  { %v2479_v22 = vpack.c.bf16 %v2475_v18, %v2474_v17 }
 0xb33   :  { %v2126_v23 = vpop.f32.mrb[64].mxu0 }
 0xb34   :  { %v4138_v24 = vpop.f32.mrb[65].mxu0 }
 0xb35   :  { %v2129_v25 = vpop.f32.mrb[66].mxu0 }
 0xb36   :  { %v2481_v26 = vpack.c.bf16 %v2129_v25, %v2126_v23  ;;  %v4139_v27 = vpop.f32.mrb[67].mxu0 }
 0xb38   :  { %v2535_v28 = vsel %vm818_vm2, %v2481_v26, 0 }
 0xb39   :  { %4195 = vmatpush3.bf16.xpose.msra.mxu0 %v2535_v28 }
 0xb3a   :  { %4206 = vmatprep.subr.bf16.mxu0 %v4483_v16 }
 0xb3b   :  { %v2232_v29 = vpop.f32.mrb[68].mxu0 }
 0xb3c   :  { %v4154_v30 = vpop.f32.mrb[69].mxu0 }
 0xb3d   :  { %v2235_v31 = vpop.f32.mrb[70].mxu0 }
 0xb3e   :  { %v2483_v32 = vpack.c.bf16 %v2235_v31, %v2232_v29  ;;  %v4155_v33 = vpop.f32.mrb[71].mxu0 }
 0xb40   :  { %v2629_v34 = vsel %vm818_vm2, %v2483_v32, 0  ;;  %4197 = vmatmul.mubr.msk.bf16.vlgmr.msra.gmra.mrb[80].mxu0 %vm818_vm2, %v2477_v57 }
 0xb41   :  { %4207 = vmatpush3.bf16.xpose.msra.mxu0 %v2629_v34  ;;  %4208 = vmatprep.mubr.msk.bf16.mxu0 %vm4484_vm1, %v4483_v16 }
 0xb42   :  { %4218 = vmatprep.subr.bf16.mxu0 %v4483_v16 }
 0xb43   :  { %v2355_v35 = vpop.f32.mrb[72].mxu0 }
 0xb44   :  { %v4170_v45 = vpop.f32.mrb[73].mxu0 }
 0xb45   :  { %v2358_v49 = vpop.f32.mrb[74].mxu0 }
 0xb46   :  { %v2765_v51 = vpack.c.bf16 %v2358_v49, %v2355_v35  ;;  %v4171_v36 = vpop.f32.mrb[75].mxu0 }
 0xb48   :  { %4209 = vmatmul.mubr.msk.bf16.vlgmr.msra.gmra.mrb[84].mxu0 %vm818_vm2, %v2479_v22 }
 0xb49   :  { %4219 = vmatpush3.bf16.msra.mxu0 %v2765_v51  ;;  %4220 = vmatprep.mubr.msk.bf16.mxu0 %vm4484_vm1, %v4483_v16 }
 0xb4a   :  { %4230 = vmatprep.subr.bf16.mxu0 %v4483_v16 }
 0xb4b   :  { %v5144_v38 = vpop.f32.mrb[76].mxu0 }
 0xb4c   :  { %v4186_v39 = vpop.f32.mrb[77].mxu0 }
 0xb4d   :  { %v5146_v41 = vpop.f32.mrb[78].mxu0 }
 0xb4e   :  { %v2767_v42 = vpack.c.bf16 %v5146_v41, %v5144_v38  ;;  %v4187_v60 = vpop.f32.mrb[79].mxu0  ;;  %v3694_v38 = vld [vmem:[%s5345_s7 + $0x10] sm:$0xf] }
 0xb4f   :  { %v2957_v41 = vsel %vm1291_vm4, %v3694_v38, 0 }
 0xbf3   :  { %v2524_v62 = vpop.f32.mrb[72].mxu1 }
 0xbf4   :  { %v2525_v46 = vadd.f32 %v4457_v44, %v2524_v62  ;;  %v4192_v43 = vpop.f32.mrb[73].mxu1 }
 0xbf5   :  { %v2527_v47 = vpop.f32.mrb[74].mxu1 }
 0xbf6   :  { %v2528_v63 = vadd.f32 %v4458_v48, %v2527_v47  ;;  %v4193_v50 = vpop.f32.mrb[75].mxu1  ;;  %v2672_v52 = vsel %vm1007_vm3, %v2525_v46, -inf }
 0xbf7   :  { %2673 = vmax.xlane.f32.xlu0 %v2672_v52 }
 0xbf8   :  { %v2675_v53 = vsel %vm1007_vm3, %v2528_v63, -inf }
 0xbf9   :  { %2676 = vmax.xlane.f32.xlu1 %v2675_v53 }
 0xbfd   :  { %v2618_v54 = vpop.f32.mrb[76].mxu1 }
 0xbfe   :  { %v4204_v55 = vpop.f32.mrb[77].mxu1  ;;  %v2619_v1 = vadd.f32 %v4457_v44, %v2618_v54 }
 0xbff   :  { %v2621_v56 = vpop.f32.mrb[78].mxu1 }
 0xc00   :  { %v4205_v57 = vpop.f32.mrb[79].mxu1  ;;  %v2622_v5 = vadd.f32 %v4458_v48, %v2621_v56  ;;  %v2684_v7 = vsel %vm1007_vm3, %v2619_v1, -inf }
 0xc02   :  { %v2687_v12 = vsel %vm1007_vm3, %v2622_v5, -inf }
 0xc13   :  { %v2571_v58 = vpop.f32.mrb[80].mxu0 }
 0xc14   :  { %v2572_v59 = vadd.f32 %v4457_v44, %v2571_v58  ;;  %v4198_v61 = vpop.f32.mrb[81].mxu0 }
 0xc15   :  { %v2574_v0 = vpop.f32.mrb[82].mxu0 }
 0xc16   :  { %v2575_v2 = vadd.f32 %v4458_v48, %v2574_v0  ;;  %v4199_v3 = vpop.f32.mrb[83].mxu0  ;;  %v2678_v4 = vsel %vm1007_vm3, %v2572_v59, -inf }
 0xc17   :  { %2679 = vmax.xlane.f32.xlu0 %v2678_v4 }
 0xc18   :  { %v2681_v6 = vsel %vm1007_vm3, %v2575_v2, -inf }
 0xc19   :  { %2682 = vmax.xlane.f32.xlu1 %v2681_v6 }
 0xc1b   :  { %v2665_v8 = vpop.f32.mrb[84].mxu0  ;;  %2685 = vmax.xlane.f32.xlu0 %v2684_v7 }
 0xc1c   :  { %v2666_v9 = vadd.f32 %v4457_v44, %v2665_v8  ;;  %v4210_v10 = vpop.f32.mrb[85].mxu0 }
 0xc1d   :  { %v2668_v13 = vpop.f32.mrb[86].mxu0  ;;  %2688 = vmax.xlane.f32.xlu1 %v2687_v12 }
 0xc1e   :  { %v2669_v14 = vadd.f32 %v4458_v48, %v2668_v13  ;;  %v4211_v17 = vpop.f32.mrb[87].mxu0  ;;  %v2690_v18 = vsel %vm1007_vm3, %v2666_v9, -inf }
 0xc1f   :  { %2691 = vmax.xlane.f32.xlu0 %v2690_v18 }
 0xc20   :  { %v2693_v20 = vsel %vm1007_vm3, %v2669_v14, -inf }
 0xc21   :  { %2694 = vmax.xlane.f32.xlu1 %v2693_v20 }
 0xc84   :  { %v2674_v21 = vpop.xlane.xlu0 %2673 }
 0xc85   :  { %v2696_v22 = vsub.f32 %v2525_v46, %v2674_v21 }
 0xc86   :  { %v2677_v23 = vpop.xlane.xlu1 %2676 }
 0xc87   :  { %v2704_v24 = vmul.f32 1.442695, %v2696_v22  ;;  %v2697_v25 = vsub.f32 %v2528_v63, %v2677_v23 }
 0xc89   :  { %4415 = vpow2.f32 %v2704_v24  ;;  %v2706_v26 = vmul.f32 1.442695, %v2697_v25 }
 0xc8b   :  { %4417 = vpow2.f32 %v2706_v26 }
 0xc93   :  { %v4416_v27 = vpop.eup %4415 }
 0xc94   :  { %v2720_v28 = vsel %vm1007_vm3, %v4416_v27, 0.0 }
 0xc95   :  { %v4418_v29 = vpop.eup %4417  ;;  %2721 = vadd.xlane.f32.xlu0 %v2720_v28 }
 0xc96   :  { %v2723_v30 = vsel %vm1007_vm3, %v4418_v29, 0.0 }
 0xc97   :  { %2724 = vadd.xlane.f32.xlu1 %v2723_v30 }
 0xca4   :  { %v2680_v31 = vpop.xlane.xlu0 %2679 }
 0xca5   :  { %v2698_v32 = vsub.f32 %v2572_v59, %v2680_v31 }
 0xca6   :  { %v2683_v33 = vpop.xlane.xlu1 %2682 }
 0xca7   :  { %v2708_v34 = vmul.f32 1.442695, %v2698_v32  ;;  %v2699_v35 = vsub.f32 %v2575_v2, %v2683_v33  ;;  %v3696_v33 = vld [vmem:[%s5345_s7 + $0x18] sm:$0xf] }
 0xca8   :  { %v2686_v45 = vpop.xlane.xlu0 %2685 }
 0xca9   :  { %4419 = vpow2.f32 %v2708_v34  ;;  %v2710_v49 = vmul.f32 1.442695, %v2699_v35  ;;  %v2700_v51 = vsub.f32 %v2619_v1, %v2686_v45 }
 0xcaa   :  { %v2689_v36 = vpop.xlane.xlu1 %2688 }
 0xcab   :  { %4421 = vpow2.f32 %v2710_v49  ;;  %v2712_v39 = vmul.f32 1.442695, %v2700_v51  ;;  %v2701_v60 = vsub.f32 %v2622_v5, %v2689_v36  ;;  %v3051_v51 = vsel %vm1291_vm4, %v3696_v33, 0 }
 0xcac   :  { %v2692_v62 = vpop.xlane.xlu0 %2691 }
 0xcad   :  { %4423 = vpow2.f32 %v2712_v39  ;;  %v2714_v44 = vmul.f32 1.442695, %v2701_v60  ;;  %v2702_v46 = vsub.f32 %v2666_v9, %v2692_v62  ;;  %v3697_v39 = vld [vmem:[%s5345_s7 + $0x1c] sm:$0xf] }
 0xcae   :  { %v2695_v43 = vpop.xlane.xlu1 %2694 }
 0xcaf   :  { %4425 = vpow2.f32 %v2714_v44  ;;  %v2716_v47 = vmul.f32 1.442695, %v2702_v46  ;;  %v2703_v48 = vsub.f32 %v2669_v14, %v2695_v43  ;;  %v3098_v43 = vsel %vm1291_vm4, %v3697_v39, 0  ;;  %v4359_v39 = vld [vmem:[%s5349_s11 + $0x10] sm:$0xff]  }
 0xcb1   :  { %4427 = vpow2.f32 %v2716_v47  ;;  %v2718_v63 = vmul.f32 1.442695, %v2703_v48 }
 0xcb3   :  { %v4420_v50 = vpop.eup %4419  ;;  %4429 = vpow2.f32 %v2718_v63 }
 0xcb4   :  { %v2726_v52 = vsel %vm1007_vm3, %v4420_v50, 0.0 }
 0xcb5   :  { %v4422_v53 = vpop.eup %4421  ;;  %2727 = vadd.xlane.f32.xlu0 %v2726_v52 }
 0xcb6   :  { %v2729_v54 = vsel %vm1007_vm3, %v4422_v53, 0.0 }
 0xcb7   :  { %v4424_v55 = vpop.eup %4423  ;;  %2730 = vadd.xlane.f32.xlu1 %v2729_v54 }
 0xcb8   :  { %v2732_v56 = vsel %vm1007_vm3, %v4424_v55, 0.0 }
 0xcb9   :  { %v4426_v57 = vpop.eup %4425  ;;  %2733 = vadd.xlane.f32.xlu0 %v2732_v56 }
 0xcba   :  { %v2735_v58 = vsel %vm1007_vm3, %v4426_v57, 0.0 }
 0xcbb   :  { %v4428_v59 = vpop.eup %4427  ;;  %2736 = vadd.xlane.f32.xlu1 %v2735_v58 }
 0xcbc   :  { %v2738_v61 = vsel %vm1007_vm3, %v4428_v59, 0.0 }
 0xcbd   :  { %v4430_v0 = vpop.eup %4429  ;;  %2739 = vadd.xlane.f32.xlu0 %v2738_v61 }
 0xcbe   :  { %v2741_v1 = vsel %vm1007_vm3, %v4430_v0, 0.0 }
 0xcbf   :  { %2742 = vadd.xlane.f32.xlu1 %v2741_v1 }
 0xd22   :  { %v2722_v2 = vpop.xlane.xlu0 %2721 }
 0xd23   :  { %4431 = vrcp.f32 %v2722_v2 }
 0xd24   :  { %v2725_v3 = vpop.xlane.xlu1 %2724 }
 0xd25   :  { %4433 = vrcp.f32 %v2725_v3 }
 0xd2d   :  { %v4432_v4 = vpop.eup %4431 }
 0xd2e   :  { %v2752_v6 = vmul.f32 %v4432_v4, %v4416_v27 }
 0xd2f   :  { %v4434_v5 = vpop.eup %4433 }
 0xd30   :  { %v2753_v7 = vmul.f32 %v4434_v5, %v4418_v29 }
 0xd32   :  { %v2760_v8 = vpack.c.bf16 %v2753_v7, %v2752_v6 }
 0xd34   :  { %4215 = vmatmul.mubr.msk.bf16.vlgmr.msra.gmra.mrb[80].mxu1 %vm1007_vm3, %v2760_v8 }
 0xd35   :  { %4225 = vmatpush3.bf16.msra.mxu1 %v2766_v19  ;;  %4226 = vmatprep.mubr.msk.bf16.mxu1 %vm4484_vm1, %v4483_v16 }
 0xd36   :  { %4236 = vmatprep.subr.bf16.mxu1 %v4483_v16 }
 0xd42   :  { %v2728_v9 = vpop.xlane.xlu0 %2727 }
 0xd43   :  { %4435 = vrcp.f32 %v2728_v9 }
 0xd44   :  { %v2731_v10 = vpop.xlane.xlu1 %2730 }
 0xd45   :  { %4437 = vrcp.f32 %v2731_v10 }
 0xd46   :  { %v2734_v12 = vpop.xlane.xlu0 %2733 }
 0xd47   :  { %4439 = vrcp.f32 %v2734_v12 }
 0xd48   :  { %v2737_v13 = vpop.xlane.xlu1 %2736 }
 0xd49   :  { %4441 = vrcp.f32 %v2737_v13 }
 0xd4a   :  { %v2740_v14 = vpop.xlane.xlu0 %2739 }
 0xd4b   :  { %4443 = vrcp.f32 %v2740_v14 }
 0xd4c   :  { %v2743_v17 = vpop.xlane.xlu1 %2742 }
 0xd4d   :  { %v4436_v18 = vpop.eup %4435  ;;  %4445 = vrcp.f32 %v2743_v17 }
 0xd4e   :  { %v2754_v15 = vmul.f32 %v4436_v18, %v4420_v50 }
 0xd4f   :  { %v4438_v11 = vpop.eup %4437 }
 0xd50   :  { %v2755_v19 = vmul.f32 %v4438_v11, %v4422_v53 }
 0xd51   :  { %v4440_v20 = vpop.eup %4439 }
 0xd52   :  { %v2761_v21 = vpack.c.bf16 %v2755_v19, %v2754_v15  ;;  %v2756_v23 = vmul.f32 %v4440_v20, %v4424_v55 }
 0xd53   :  { %v4442_v22 = vpop.eup %4441 }
 0xd54   :  { %v2757_v24 = vmul.f32 %v4442_v22, %v4426_v57  ;;  %4221 = vmatmul.mubr.msk.bf16.vlgmr.msra.gmra.mrb[88].mxu0 %vm1007_vm3, %v2761_v21  ;;  %v3703_v22 = vld [vmem:[%s5346_s8 + $0x1] ss:$0 sm:$0xff] }
 0xd55   :  { %v4444_v25 = vpop.eup %4443  ;;  %4231 = vmatpush3.bf16.msra.mxu0 %v2767_v42  ;;  %4232 = vmatprep.mubr.msk.bf16.mxu0 %vm4484_vm1, %v4483_v16  ;;  %v3695_v42 = vld [vmem:[%s5345_s7 + $0x14] sm:$0xf] }
 0xd56   :  { %v2762_v26 = vpack.c.bf16 %v2757_v24, %v2756_v23  ;;  %4242 = vmatprep.subr.bf16.mxu0 %v4483_v16  ;;  %v2758_v28 = vmul.f32 %v4444_v25, %v4428_v59  ;;  %v3004_v31 = vsel %vm1291_vm4, %v3695_v42, 0 }
 0xd57   :  { %v4446_v27 = vpop.eup %4445 }
 0xd58   :  { %v2759_v29 = vmul.f32 %v4446_v27, %v4430_v0  ;;  %4227 = vmatmul.mubr.msk.bf16.vlgmr.msra.gmra.mrb[84].mxu1 %vm1007_vm3, %v2762_v26 }
 0xd59   :  { %4238 = vmatprep.mubr.msk.bf16.mxu1 %vm4484_vm1, %v4483_v16  ;;  %4237 = vmatpush3.bf16.msra.mxu1 %v2957_v41 }
 0xd5a   :  { %v2763_v30 = vpack.c.bf16 %v2759_v29, %v2758_v28  ;;  %4248 = vmatprep.subr.bf16.mxu1 %v4483_v16 }
 0xd5c   :  { %4233 = vmatmul.mubr.msk.bf16.vlgmr.msra.gmra.mrb[92].mxu0 %vm1007_vm3, %v2763_v30 }
 0xd5d   :  { %4244 = vmatprep.mubr.msk.bf16.mxu0 %vm4484_vm1, %v4483_v16  ;;  %4243 = vmatpush3.bf16.msra.mxu0 %v3004_v31 }
 0xd5e   :  { %4254 = vmatprep.subr.bf16.mxu0 %v4483_v16 }
 0xe07   :  { %v2805_v32 = vpop.f32.mrb[80].mxu1 }
 0xe08   :  { %v4216_v34 = vpop.f32.mrb[81].mxu1 }
 0xe09   :  { %v2808_v35 = vpop.f32.mrb[82].mxu1 }
 0xe0a   :  { %v2944_v45 = vpack.c.bf16 %v2808_v35, %v2805_v32  ;;  %v4217_v49 = vpop.f32.mrb[83].mxu1 }
 0xe0c   :  { %4239 = vmatmul.mubr.msk.bf16.vlgmr.msra.gmra.mrb[88].mxu1 %vm818_vm2, %v2944_v45 }
 0xe0d   :  { %4249 = vmatpush3.bf16.msra.mxu1 %v3051_v51  ;;  %4250 = vmatprep.mubr.msk.bf16.mxu1 %vm4484_vm1, %v4483_v16 }
 0xe0e   :  { %4260 = vmatprep.subr.bf16.mxu1 %v4483_v16 }
 0xe27   :  { %v2849_v36 = vpop.f32.mrb[88].mxu0 }
 0xe28   :  { %v4222_v60 = vpop.f32.mrb[89].mxu0 }
 0xe29   :  { %v2852_v62 = vpop.f32.mrb[90].mxu0  ;;  %v4360_v60 = vld [vmem:[%s5349_s11 + $0x18] sm:$0xff]  }
 0xe2a   :  { %v2945_v44 = vpack.c.bf16 %v2852_v62, %v2849_v36  ;;  %v4223_v46 = vpop.f32.mrb[91].mxu0  ;;  %v4361_v62 = vld [vmem:[%s5351_s13 + $0x40] sm:$0xff]  }
 0xe2b   :  { %v2893_v47 = vpop.f32.mrb[84].mxu1  ;;  %v4363_v46 = vld [vmem:[%s5351_s13 + $0x50] sm:$0xff]  }
 0xe2c   :  { %v4228_v48 = vpop.f32.mrb[85].mxu1  ;;  %4245 = vmatmul.mubr.msk.bf16.vlgmr.msra.gmra.mrb[96].mxu0 %vm818_vm2, %v2945_v44  ;;  %v4362_v44 = vld [vmem:[%s5351_s13 + $0x48] sm:$0xff]  }
 0xe2d   :  { %v2896_v63 = vpop.f32.mrb[86].mxu1  ;;  %4255 = vmatpush3.bf16.msra.mxu0 %v3098_v43  ;;  %4256 = vmatprep.mubr.msk.bf16.mxu0 %vm4484_vm1, %v4483_v16  ;;  %v4364_v43 = vld [vmem:[%s5351_s13 + $0x58] sm:$0xff]   ;;  %v4366_v48 = vld [vmem:[%s5351_s13 + $0x68] sm:$0xff]  }
 0xe2e   :  { %v2946_v50 = vpack.c.bf16 %v2896_v63, %v2893_v47  ;;  %v4229_v52 = vpop.f32.mrb[87].mxu1  ;;  %4268 = vmatprep.subr.bf16.mxu0 %v4483_v16  ;;  %v4365_v47 = vld [vmem:[%s5351_s13 + $0x60] sm:$0xff]  }
 0xe2f   :  { %v2937_v53 = vpop.f32.mrb[92].mxu0 }
 0xe30   :  { %v4234_v54 = vpop.f32.mrb[93].mxu0  ;;  %4251 = vmatmul.mubr.msk.bf16.vlgmr.msra.gmra.mrb[92].mxu1 %vm818_vm2, %v2946_v50 }
 0xe31   :  { %v2940_v55 = vpop.f32.mrb[94].mxu0  ;;  %4264 = vmatprep.mubr.msk.bf16.mxu1 %vm4484_vm1, %v4483_v16  ;;  %4261 = vmatpush3.bf16.msra.mxu1 %v4359_v39 }
 0xe32   :  { %v2947_v56 = vpack.c.bf16 %v2940_v55, %v2937_v53  ;;  %v4235_v57 = vpop.f32.mrb[95].mxu0  ;;  %4262 = vmatprep.subr.bf16.mxu1 %v4483_v16 }
 0xe33   :  { %v3706_v57 = vld [vmem:[%s5347_s9 + $0x1] ss:$0 sm:$0xff] }
 0xe34   :  { %4257 = vmatmul.mubr.msk.bf16.vlgmr.msra.gmra.mrb[100].mxu0 %vm818_vm2, %v2947_v56 }
 0xe35   :  { %4284 = vmatprep.mubr.msk.bf16.mxu0 %vm4484_vm1, %v4483_v16  ;;  %4263 = vmatpush3.bf16.msra.mxu1 %v4360_v60 }
 0xe36   :  { %4288 = vmatprep.subr.bf16.mxu1 %v4483_v16  ;;  %4269 = vmatpush3.bf16.msra.mxu0 %v4361_v62 }
 0xe37   :  { %4270 = vmatprep.subr.bf16.mxu0 %v4483_v16 }
 0xe3a   :  { %4271 = vmatpush3.bf16.msra.mxu0 %v4362_v44 }
 0xe3b   :  { %4272 = vmatprep.subr.bf16.mxu0 %v4483_v16 }
 0xe3e   :  { %4273 = vmatpush3.bf16.msra.mxu0 %v4363_v46  ;;  %v3743_v46 = vld [vmem:[%s5353_s15] ss:$0 sm:$0xff]  ;;  %s4485_s15 = smov [#allocation2]  }
 0xe3f   :  { %4274 = vmatprep.subr.bf16.mxu0 %v4483_v16  ;;  %s3521_s26 = sshll.u32 %s4485_s15, 4  ;;  %s3522_s26 = int_to_ptr.vmem [resolvable:$true] %s3521_s26 }
 0xe40   :  { %p4464_p1 = scmp.lt.s32.totalorder %s3522_s26, %s3522_s26 }
 0xe42   :  { %4275 = vmatpush3.bf16.msra.mxu0 %v4364_v43 }
 0xe43   :  { %4276 = vmatprep.subr.bf16.mxu0 %v4483_v16 }
 0xe46   :  { %4277 = vmatpush3.bf16.msra.mxu0 %v4365_v47 }
 0xe47   :  { %4278 = vmatprep.subr.bf16.mxu0 %v4483_v16 }
 0xe4a   :  { %4279 = vmatpush3.bf16.msra.mxu0 %v4366_v48 }
 0xe4b   :  { %4280 = vmatprep.subr.bf16.mxu0 %v4483_v16 }
 0xedf   :  { %v2993_v58 = vpop.f32.mrb[88].mxu1 }
 0xee0   :  { %v4240_v59 = vpop.f32.mrb[89].mxu1  ;;  %v3141_v2 = vsel %vm70_vm0, %v2993_v58, 0.0 }
 0xee1   :  { %v2996_v61 = vpop.f32.mrb[90].mxu1 }
 0xee2   :  { %v4241_v0 = vpop.f32.mrb[91].mxu1  ;;  %v3148_v7 = vsel %vm70_vm0, %v2996_v61, 0.0 }
 0xeff   :  { %v3040_v1 = vpop.f32.mrb[96].mxu0 }
 0xf00   :  { %v3142_v3 = vsel %vm70_vm0, %v3040_v1, 0.0  ;;  %v4246_v4 = vpop.f32.mrb[97].mxu0  ;;  %v3707_v1 = vld [vmem:[%s5348_s10 + $0x1] ss:$0 sm:$0xff] }
 0xf01   :  { %v3143_v5 = vadd.f32 %v3142_v3, %v3141_v2  ;;  %v3043_v6 = vpop.f32.mrb[98].mxu0 }
 0xf02   :  { %v3149_v8 = vsel %vm70_vm0, %v3043_v6, 0.0  ;;  %v4247_v9 = vpop.f32.mrb[99].mxu0  ;;  %v4367_v6 = vld [vmem:[%s5351_s13 + $0x70] sm:$0xff]  }
 0xf03   :  { %v3150_v10 = vadd.f32 %v3149_v8, %v3148_v7  ;;  %v3087_v12 = vpop.f32.mrb[92].mxu1  ;;  %4281 = vmatpush3.bf16.msra.mxu0 %v4367_v6  ;;  %v4368_v7 = vld [vmem:[%s5351_s13 + $0x78] sm:$0xff]   ;;  %v3713_v8 = vld [vmem:[%s5350_s12 + $0x1] ss:$0 sm:$0xff] }
 0xf04   :  { %v3144_v13 = vsel %vm70_vm0, %v3087_v12, 0.0  ;;  %v4252_v14 = vpop.f32.mrb[93].mxu1  ;;  %4282 = vmatprep.subr.bf16.mxu0 %v4483_v16 }
 0xf05   :  { %v3145_v17 = vadd.f32 %v3144_v13, %v3143_v5  ;;  %v3090_v18 = vpop.f32.mrb[94].mxu1 }
 0xf06   :  { %v3151_v11 = vsel %vm70_vm0, %v3090_v18, 0.0  ;;  %v4253_v15 = vpop.f32.mrb[95].mxu1 }
 0xf07   :  { %v3152_v19 = vadd.f32 %v3151_v11, %v3150_v10  ;;  %v3134_v20 = vpop.f32.mrb[100].mxu0  ;;  %4283 = vmatpush3.bf16.msra.mxu0 %v4368_v7 }
 0xf08   :  { %v3146_v21 = vsel %vm70_vm0, %v3134_v20, 0.0  ;;  %v4258_v23 = vpop.f32.mrb[101].mxu0 }
 0xf09   :  { %v3147_v24 = vadd.f32 %v3146_v21, %v3145_v17  ;;  %v3137_v25 = vpop.f32.mrb[102].mxu0 }
 0xf0a   :  { %v3153_v26 = vsel %vm70_vm0, %v3137_v25, 0.0  ;;  %v4259_v27 = vpop.f32.mrb[103].mxu0 }
 0xf0b   :  { %v3163_v28 = vadd.f32 %v3703_v22, %v3147_v24  ;;  %v3154_v29 = vadd.f32 %v3153_v26, %v3152_v19  ;;  %v3734_v19 = vld [vmem:[%s5352_s14 + $0x1] ss:$0 sm:$0xff] }
 0xf0d   :  { %v3164_v30 = vadd.f32 %v3703_v22, %v3154_v29  ;;  %v5236_v38 = vadd.f32 %v3163_v28, %v4951_v37 }
 0xf0f   :  { %v3171_v41 = vsel %vm70_vm0, %v5236_v38, 0.0  ;;  %v5241_v42 = vadd.f32 %v3164_v30, %v4954_v40 }
 0xf10   :  { %3172 = vadd.xlane.f32.xlu0 %v3171_v41 }
 0xf11   :  { %v3174_v31 = vsel %vm70_vm0, %v5241_v42, 0.0 }
 0xf12   :  { %3175 = vadd.xlane.f32.xlu1 %v3174_v31 }
 0xf9d   :  { %v3173_v32 = vpop.xlane.xlu0 %3172 }
 0xf9e   :  { %v3177_v33 = vmul.f32 0.03125, %v3173_v32 }
 0xf9f   :  { %v3176_v34 = vpop.xlane.xlu1 %3175 }
 0xfa0   :  { %v3179_v35 = vsub.f32 %v5236_v38, %v3177_v33  ;;  %v3178_v45 = vmul.f32 0.03125, %v3176_v34 }
 0xfa2   :  { %v3180_v37 = vsub.f32 %v5241_v42, %v3178_v45  ;;  %v3181_v49 = vmul.f32 %v3179_v35, %v3179_v35 }
 0xfa4   :  { %v3183_v51 = vsel %vm70_vm0, %v3181_v49, 0.0  ;;  %v3182_v36 = vmul.f32 %v3180_v37, %v3180_v37  ;;  %v4370_v49 = vld [vmem:[%s5355_s17 + $0x8] sm:$0xff]  }
 0xfa5   :  { %3184 = vadd.xlane.f32.xlu0 %v3183_v51 }
 0xfa6   :  { %v3186_v40 = vsel %vm70_vm0, %v3182_v36, 0.0 }
 0xfa7   :  { %3187 = vadd.xlane.f32.xlu1 %v3186_v40 }
0x1032   :  { %v3185_v63 = vpop.xlane.xlu0 %3184 }
0x1033   :  { %v3189_v50 = vmul.f32 0.03125, %v3185_v63 }
0x1034   :  { %v3188_v52 = vpop.xlane.xlu1 %3187 }
0x1035   :  { %v3191_v53 = vadd.f32 1e-05, %v3189_v50  ;;  %v3190_v54 = vmul.f32 0.03125, %v3188_v52 }
0x1037   :  { %4447 = vrsqrt.f32 %v3191_v53  ;;  %v3192_v55 = vadd.f32 1e-05, %v3190_v54 }
0x1039   :  { %4449 = vrsqrt.f32 %v3192_v55  ;;  %v3745_v55 = vld [vmem:[%s5356_s18] ss:$0 sm:$0xff] }
0x1041   :  { %v4448_v56 = vpop.eup %4447 }
0x1042   :  { %v3195_v58 = vmul.f32 %v4448_v56, %v3179_v35 }
0x1043   :  { %v4450_v59 = vpop.eup %4449 }
0x1044   :  { %v3203_v61 = vmul.f32 %v3706_v57, %v3195_v58  ;;  %v3196_v0 = vmul.f32 %v4450_v59, %v3180_v37 }
0x1046   :  { %v3204_v2 = vmul.f32 %v3706_v57, %v3196_v0  ;;  %v3211_v3 = vadd.f32 %v3707_v1, %v3203_v61 }
0x1048   :  { %v3212_v4 = vadd.f32 %v3707_v1, %v3204_v2 }
0x104a   :  { %v3213_v5 = vpack.c.bf16 %v3212_v4, %v3211_v3 }
0x104c   :  { %4265 = vmatmul.mubr.msk.bf16.vlgmr.msra.gmra.mrb[96].mxu1 %vm70_vm0, %v3213_v5 }
0x104d   :  { %4292 = vmatprep.mubr.msk.bf16.mxu1 %vm4484_vm1, %v4483_v16 }
0x111f   :  { %v3276_v9 = vpop.f32.mrb[96].mxu1 }
0x1120   :  { %v3277_v10 = vadd.f32 %v3713_v8, %v3276_v9  ;;  %v4266_v12 = vpop.f32.mrb[97].mxu1 }
0x1121   :  { %v3279_v13 = vpop.f32.mrb[98].mxu1 }
0x1122   :  { %v3280_v14 = vadd.f32 %v3713_v8, %v3279_v13  ;;  %v4267_v17 = vpop.f32.mrb[99].mxu1  ;;  %v3283_v18 = vmax.f32 %v3277_v10, 0.0 }
0x1124   :  { %v3284_v11 = vmax.f32 %v3280_v14, 0.0 }
0x1126   :  { %v3285_v15 = vpack.c.bf16 %v3284_v11, %v3283_v18 }
0x1128   :  { %4285 = vmatmul.mubr.bf16.vlgmr.msra.gmra.mrb[104].mxu0 %v3285_v15 }
0x11fb   :  { %v3393_v20 = vpop.f32.mrb[104].mxu0 }
0x11fc   :  { %v3394_v21 = vadd.f32 %v3734_v19, %v3393_v20  ;;  %v4286_v22 = vpop.f32.mrb[105].mxu0 }
0x11fd   :  { %v3396_v23 = vpop.f32.mrb[106].mxu0 }
0x11fe   :  { %v3397_v24 = vadd.f32 %v3734_v19, %v3396_v23  ;;  %v4287_v25 = vpop.f32.mrb[107].mxu0  ;;  %v3400_v26 = vadd.f32 %v3394_v21, %v5236_v38 }
0x1200   :  { %v3404_v27 = vsel %vm70_vm0, %v3400_v26, 0.0  ;;  %v3401_v28 = vadd.f32 %v3397_v24, %v5241_v42  ;;  %v4369_v42 = vld [vmem:[%s5355_s17] sm:$0xff]  }
0x1201   :  { %3405 = vadd.xlane.f32.xlu0 %v3404_v27  ;;  %4289 = vmatpush3.bf16.msra.mxu1 %v4369_v42 }
0x1202   :  { %v3407_v29 = vsel %vm70_vm0, %v3401_v28, 0.0  ;;  %4290 = vmatprep.subr.bf16.mxu1 %v4483_v16  ;;  %v3744_v16 = vld [vmem:[%s5354_s16] ss:$0 sm:$0xff]  ;;  %s4459_s16 = scalar_lea.vmem %s3522_s26, 256 }
0x1203   :  { %3408 = vadd.xlane.f32.xlu1 %v3407_v29  ;;  %p4460_p0 = scmp.ne.s32.totalorder %s3522_s26, %s4459_s16  ;;  %p4465_p2 = scmp.lt.s32.totalorder %s4459_s16, %s4459_s16 }
0x1205   :  { %4291 = vmatpush3.bf16.msra.mxu1 %v4370_v49  ;;  %p4466_p3 = por %p4465_p2, %p4464_p1 }
0x1207   :  { %p4467_p4 = pnand %p4466_p3, %p4460_p0 }
0x128e   :  { %v3406_v30 = vpop.xlane.xlu0 %3405 }
0x128f   :  { %v3410_v41 = vmul.f32 0.03125, %v3406_v30 }
0x1290   :  { %v3409_v31 = vpop.xlane.xlu1 %3408 }
0x1291   :  { %v3412_v32 = vsub.f32 %v3400_v26, %v3410_v41  ;;  %v3411_v33 = vmul.f32 0.03125, %v3409_v31 }
0x1293   :  { %v3413_v34 = vsub.f32 %v3401_v28, %v3411_v33  ;;  %v3414_v35 = vmul.f32 %v3412_v32, %v3412_v32 }
0x1295   :  { %v3416_v45 = vsel %vm70_vm0, %v3414_v35, 0.0  ;;  %v3415_v37 = vmul.f32 %v3413_v34, %v3413_v34 }
0x1296   :  { %3417 = vadd.xlane.f32.xlu0 %v3416_v45 }
0x1297   :  { %v3419_v38 = vsel %vm70_vm0, %v3415_v37, 0.0 }
0x1298   :  { %3420 = vadd.xlane.f32.xlu1 %v3419_v38 }
0x1323   :  { %v3418_v51 = vpop.xlane.xlu0 %3417 }
0x1324   :  { %v3422_v36 = vmul.f32 0.03125, %v3418_v51 }
0x1325   :  { %v3421_v40 = vpop.xlane.xlu1 %3420 }
0x1326   :  { %v3424_v39 = vadd.f32 1e-05, %v3422_v36  ;;  %v3423_v60 = vmul.f32 0.03125, %v3421_v40 }
0x1328   :  { %4451 = vrsqrt.f32 %v3424_v39  ;;  %v3425_v62 = vadd.f32 1e-05, %v3423_v60 }
0x132a   :  { %4453 = vrsqrt.f32 %v3425_v62 }
0x1332   :  { %v4452_v44 = vpop.eup %4451 }
0x1333   :  { %v3428_v43 = vmul.f32 %v4452_v44, %v3412_v32 }
0x1334   :  { %v4454_v47 = vpop.eup %4453 }
0x1335   :  { %v3436_v48 = vmul.f32 %v3743_v46, %v3428_v43  ;;  %v3429_v63 = vmul.f32 %v4454_v47, %v3413_v34 }
0x1337   :  { %v3437_v50 = vmul.f32 %v3743_v46, %v3429_v63  ;;  %v3444_v52 = vadd.f32 %v3744_v16, %v3436_v48 }
0x1339   :  { %v3445_v53 = vadd.f32 %v3744_v16, %v3437_v50 }
0x133b   :  { %v3446_v54 = vpack.c.bf16 %v3445_v53, %v3444_v52 }
0x133d   :  { %4293 = vmatmul.mubr.msk.bf16.vlgmr.msra.gmra.mrb[100].mxu1 %vm70_vm0, %v3446_v54 }
0x1410   :  { %v3507_v56 = vpop.f32.mrb[100].mxu1 }
0x1411   :  { %v3508_v57 = vadd.f32 %v3745_v55, %v3507_v56  ;;  %v4294_v58 = vpop.f32.mrb[101].mxu1 }
0x1412   :  { %v3510_v59 = vpop.f32.mrb[102].mxu1 }
0x1413   :  { %3514 = vst [vmem:[#allocation2] sm:$0xff] %v3508_v57  ;;  %v3511_v61 = vadd.f32 %v3745_v55, %v3510_v59  ;;  %v4295_v0 = vpop.f32.mrb[103].mxu1 }
0x1415   :  { %3515 = vst [vmem:[#allocation2 + $0x8] sm:$0xff] %v3511_v61 }
0x1416   :  { %4470 = shalt.err (!%p4467_p4)
}
0x1417   :  { %s4471_s23 = scalar_lea.hbm %s5357_s19, 256 }
0x1418   :  { %p4472_p5 = scmp.ne.s32.totalorder %s5357_s19, %s4471_s23  ;;  %p4475_p6 = scmp.lt.u32.totalorder %s4471_s23, %s5357_s19 }
0x141a   :  { %p4477_p7 = pnand %p4475_p6, %p4472_p5 }
0x141c   :  { %4480 = shalt.err (!%p4477_p7)
}
0x141d   :  { %s4486_s0 = smov 128   ;;  %s4487_s7 = smov 8  }
0x141e   :  { %3527 = dma.vmem_to_hbm [thread:$0]  %s3522_s26, 256, %s5357_s19, [#allocation3], %s4486_s0, %s4486_s0, %s4487_s7  }
0x141f   :  { %4481 = dma.done.wait [#allocation3], 256  }
0x1420   :  { %4482 = vsyncadd [#allocation3], 4294967040 }
0x1421   :  { %3531 = vsyncpa [#allocation3], 1 }

</bundles_post_ra>
